<compile_context>
chip_gen: v5e
topology: v5e:2x2
jax: 0.10.0
libtpu: 0.0.40
codegen_flags: <defaults>
</compile_context>

<pallas_src>
import functools

import numpy as np
import jax
import jax.numpy as jnp
from jax.experimental import pallas as pl
from jax.experimental.pallas import tpu as pltpu

LANE = 128
MAP_TILE_MAX = 1024      # nodes per grid step in the map-integration kernel (multiple of 256)
MAX_ELEM_ROWS = 512      # sublane rows per block for the elementwise kernels (512*128 nodes/tile)
_NUM_SUMS = 7


def _ceil_to(n, m):
    return ((n + m - 1) // m) * m


def _node_layout(n):
    """(n_pad, rows, block_rows) for the padded, sublane-dense node-attribute layout."""
    n = max(int(n), 1)
    rows = _ceil_to(pl.cdiv(n, LANE), 8)          # (8,128) granularity -> n_pad multiple of 1024
    if rows <= 16:
        block_rows = rows                          # tiny design: single block
    else:
        # >= 2 grid steps (v7x megacore) with blocks as large as the cap allows (v6e roofline)
        block_rows = min(MAX_ELEM_ROWS, _ceil_to((rows + 1) // 2, 8))
        rows = _ceil_to(rows, block_rows)
    return rows * LANE, rows, block_rows


def _choose_map_tile(n_pad, nbx_pad, nby_pad):
    """Nodes per grid step for the map kernel: >=2 steps, bounded f32 intermediates."""
    tile = MAP_TILE_MAX
    while tile > 256 and n_pad // tile < 2:                              # keep both TCs busy
        tile //= 2
    while tile > 256 and (3 * nbx_pad + nby_pad) * tile * 4 > 12 * 2**20:  # VMEM budget (v5e/v7x)
        tile //= 2
    return tile


# ----------------------------------------------------------------------------- kernels
def _fused_node_area_kernel(x_ref, y_ref, sx_ref, sy_ref, pw_ref, maps_ref,
                            route_ref, pin_ref, *,
                            xl, yl, bin_w, bin_h, nbx_pad, nby_pad, inv_upc):
    # x/y/sx/sy/pw refs: (1, TILE) f32; maps: (2*nbx_pad, nby_pad) bf16 = [route; pin] (zero padded)
    x_min = x_ref[...]
    y_min = y_ref[...]
    sx = sx_ref[...]
    sy = sy_ref[...]
    x_max = x_min + sx
    y_max = y_min + sy

    bx = jax.lax.broadcasted_iota(jnp.int32, (nbx_pad, 1), 0).astype(jnp.float32)
    lo_x = xl + bx * bin_w
    ox_t = jnp.maximum(jnp.minimum(x_max, lo_x + bin_w) - jnp.maximum(x_min, lo_x), 0.0)  # (nbx_pad, T)

    by = jax.lax.broadcasted_iota(jnp.int32, (nby_pad, 1), 0).astype(jnp.float32)
    lo_y = yl + by * bin_h
    oy_t = jnp.maximum(jnp.minimum(y_max, lo_y + bin_h) - jnp.maximum(y_min, lo_y), 0.0)  # (nby_pad, T)

    # Single bf16 MXU pass over the stacked maps: (2*nbx_pad, nby_pad) @ (nby_pad, T) -> f32
    tmp = jnp.dot(maps_ref[...], oy_t.astype(jnp.bfloat16),
                  preferred_element_type=jnp.float32)
    route_area = jnp.sum(ox_t * tmp[:nbx_pad], axis=0, keepdims=True)   # (1, T)
    pin_raw = jnp.sum(ox_t * tmp[nbx_pad:], axis=0, keepdims=True)      # (1, T)

    route_ref[...] = route_area
    # ComputeNodeAreaFromPinMap post-scale folded in; exact guard (0 for padded / degenerate nodes).
    old = sx * sy
    pin_ref[...] = jnp.where(old > 0.0, pin_raw * pw_ref[...] * inv_upc / old, 0.0)


def _area_increment_kernel(sx_ref, sy_ref, res_ref, route_ref, pin_ref, lut_ref, flop_ref,
                           inc_ref, sums_ref):
    sx = sx_ref[...]
    sy = sy_ref[...]
    res = res_ref[...]
    route = route_ref[...]
    pin = pin_ref[...]
    lut = lut_ref[...]
    flop = flop_ref[...]

    old = sx * sy                      # not written back: recomputed in the apply-scale kernel
    inc = jnp.maximum(jnp.maximum(res, jnp.maximum(route, pin)) - old, 0.0)
    inc_ref[...] = inc

    flop_lut = jnp.minimum(lut + flop, 1.0)
    partials = (
        jnp.sum(old * lut),
        jnp.sum(old * flop),
        jnp.sum(inc * lut),
        jnp.sum(inc * flop),
        jnp.sum(jnp.maximum(res - old, 0.0) * flop_lut),
        jnp.sum(jnp.maximum(route - old, 0.0) * flop_lut),
        jnp.sum(jnp.maximum(pin - old, 0.0) * flop_lut),
    )
    lane = jax.lax.broadcasted_iota(jnp.int32, (1, LANE), 1)
    vec = jnp.zeros((1, LANE), jnp.float32)
    for idx, v in enumerate(partials):
        vec = jnp.where(lane == idx, v, vec)
    sums_ref[...] = vec


def _apply_scale_kernel(scal_ref, sx_ref, sy_ref, inc_ref, lut_ref, flop_ref,
                        nsx_ref, nsy_ref, ratio_ref):
    s_lut = scal_ref[0]       # SMEM scalars
    s_flop = scal_ref[1]
    adj = scal_ref[2]         # 0/1 adjust_area_flag
    sx = sx_ref[...]
    sy = sy_ref[...]
    old = sx * sy             # recomputed (saves an HBM round-trip of old_movable_area)
    inc = inc_ref[...]
    new_area = old + inc * (s_lut * lut_ref[...] + s_flop * flop_ref[...])
    ratio = jnp.sqrt(jnp.where(old > 0.0, new_area / jnp.maximum(old, 1e-12), 1.0))
    ratio = jnp.where(adj > 0.5, ratio, 1.0)
    nsx_ref[...] = sx * ratio
    nsy_ref[...] = sy * ratio
    ratio_ref[...] = ratio


# ----------------------------------------------------------------------------- wrappers
def fused_node_area(x_row, y_row, sx_row, sy_row, pw_row, route_map, pin_map,
                    xl, yl, bin_w, bin_h, unit_pin_capacity):
    """Route + pin utilization integrals for all nodes in one pallas_call (bf16 MXU)."""
    n_pad = x_row.shape[1]
    nbx, nby = route_map.shape
    nbx_pad = _ceil_to(int(nbx), 8)          # sublane-aligned route/pin split of the MXU result
    nby_pad = _ceil_to(int(nby), LANE)       # lane-dense MXU contraction dim

    def pad_map(m):
        m = jnp.asarray(m, jnp.float32)
        return jnp.pad(m, ((0, nbx_pad - nbx), (0, nby_pad - nby)))

    # zero rows/cols are mathematically inert; bf16 halves DMA/VMEM and uses the fast MXU path
    maps = jnp.concatenate([pad_map(route_map), pad_map(pin_map)], axis=0).astype(jnp.bfloat16)

    map_tile = _choose_map_tile(n_pad, nbx_pad, nby_pad)
    vec = pl.BlockSpec((1, map_tile), lambda i: (0, i))
    # TODO(synk): the grid-invariant maps input could be single-buffered (pipeline_mode=
    # pl.Buffered(1)) for extra VMEM headroom at very large bin counts.
    maps_spec = pl.BlockSpec((2 * nbx_pad, nby_pad), lambda i: (0, 0))

    # explicit VMEM budget: double-buffered maps (bf16) + node vectors + f32 intermediates
    est = (2 * (2 * nbx_pad) * nby_pad * 2
           + 7 * 2 * map_tile * 4
           + (3 * nbx_pad + 2 * nby_pad) * map_tile * 4)
    vmem_limit = int(min(60 * 2**20, max(32 * 2**20, 2 * est)))

    kernel = functools.partial(
        _fused_node_area_kernel, xl=float(xl), yl=float(yl),
        bin_w=float(bin_w), bin_h=float(bin_h), nbx_pad=int(nbx_pad), nby_pad=int(nby_pad),
        inv_upc=1.0 / max(float(unit_pin_capacity), 1e-12))
    route_area, pin_area = pl.pallas_call(
        kernel,
        out_shape=(jax.ShapeDtypeStruct((1, n_pad), jnp.float32),
                   jax.ShapeDtypeStruct((1, n_pad), jnp.float32)),
        grid_spec=pltpu.PrefetchScalarGridSpec(
            num_scalar_prefetch=0,
            grid=(n_pad // map_tile,),
            in_specs=[vec, vec, vec, vec, vec, maps_spec],
            out_specs=(vec, vec)),
        compiler_params=pltpu.CompilerParams(
            dimension_semantics=("parallel",),
            vmem_limit_bytes=vmem_limit),
    )(x_row, y_row, sx_row, sy_row, pw_row, maps)
    return route_area, pin_area


def compute_area_increment(sx_g, sy_g, res_g, route_g, pin_g, lut_g, flop_g, block_rows):
    """area increment and the 7 fused scalar reductions (old area is NOT round-tripped)."""
    rows = sx_g.shape[0]
    nt = rows // block_rows
    blk = pl.BlockSpec((block_rows, LANE), lambda i: (i, 0))
    sums_spec = pl.BlockSpec((1, LANE), lambda i: (0, i))
    inc, psums = pl.pallas_call(
        _area_increment_kernel,
        out_shape=(jax.ShapeDtypeStruct((rows, LANE), jnp.float32),
                   jax.ShapeDtypeStruct((1, nt * LANE), jnp.float32)),
        grid_spec=pltpu.PrefetchScalarGridSpec(
            num_scalar_prefetch=0,
            grid=(nt,),
            in_specs=[blk] * 7,
            out_specs=(blk, sums_spec)),
        compiler_params=pltpu.CompilerParams(dimension_semantics=("parallel",)),
    )(sx_g, sy_g, res_g, route_g, pin_g, lut_g, flop_g)
    sums = psums.reshape(nt, LANE).sum(axis=0)[:_NUM_SUMS]
    return inc, sums


def apply_scale(scalars, sx_g, sy_g, inc_g, lut_g, flop_g, block_rows):
    """new node sizes + gated inflation ratio (adjust flag folded in via SMEM scalar)."""
    rows = sx_g.shape[0]
    nt = rows // block_rows
    blk = pl.BlockSpec((block_rows, LANE), lambda i: (i, 0))
    smem = pl.BlockSpec(memory_space=pltpu.MemorySpace.SMEM)
    nsx, nsy, ratio = pl.pallas_call(
        _apply_scale_kernel,
        out_shape=(jax.ShapeDtypeStruct((rows, LANE), jnp.float32),
                   jax.ShapeDtypeStruct((rows, LANE), jnp.float32),
                   jax.ShapeDtypeStruct((rows, LANE), jnp.float32)),
        grid_spec=pltpu.PrefetchScalarGridSpec(
            num_scalar_prefetch=0,
            grid=(nt,),
            in_specs=[smem] + [blk] * 5,
            out_specs=(blk, blk, blk)),
        compiler_params=pltpu.CompilerParams(dimension_semantics=("parallel",)),
    )(jnp.asarray(scalars, jnp.float32), sx_g, sy_g, inc_g, lut_g, flop_g)
    return nsx, nsy, ratio


# ----------------------------------------------------------------------------- module
class AdjustNodeAreaTPU:
    """JAX/Pallas port of dreamplacefpga AdjustNodeArea.forward.

    Assumes resource_areas, route_utilization_map and pin_utilization_map are all provided
    (the path exercised in the reference when all three are not None), and that
    num_mlab_nodes == 0 and num_ccNodes == 0.
    """

    def __init__(self, *, xl, yl, xh, yh, num_bins_x, num_bins_y,
                 num_movable_nodes, num_filler_nodes, filler_start_map,
                 lut_mask, flop_mask, pin_weights, pin2node_map,
                 total_place_area, total_whitespace_area,
                 max_route_opt_adjust_rate=2.5, route_opt_adjust_exponent=2.5,
                 max_pin_opt_adjust_rate=2.5,
                 area_adjust_stop_ratio=0.01, route_area_adjust_stop_ratio=0.01,
                 pin_area_adjust_stop_ratio=0.05, unit_pin_capacity=1.0):
        self.xl, self.yl, self.xh, self.yh = map(float, (xl, yl, xh, yh))
        self.num_bins_x, self.num_bins_y = int(num_bins_x), int(num_bins_y)
        self.bin_size_x = (self.xh - self.xl) / self.num_bins_x
        self.bin_size_y = (self.yh - self.yl) / self.num_bins_y
        self.num_movable_nodes = int(num_movable_nodes)
        self.num_filler_nodes = int(num_filler_nodes)
        self.filler_start_map = np.asarray(filler_start_map, dtype=np.int64)
        self.lut_mask = jnp.asarray(lut_mask, jnp.float32)
        self.flop_mask = jnp.asarray(flop_mask, jnp.float32)
        self.pin_weights = jnp.asarray(pin_weights, jnp.float32)
        self.pin2node_map = jnp.asarray(pin2node_map, jnp.int32)
        self.total_place_area = float(total_place_area)
        self.total_whitespace_area = float(total_whitespace_area)
        self.max_route_opt_adjust_rate = float(max_route_opt_adjust_rate)
        self.min_route_opt_adjust_rate = 1.0 / float(max_route_opt_adjust_rate)
        self.route_opt_adjust_exponent = float(route_opt_adjust_exponent)
        self.max_pin_opt_adjust_rate = float(max_pin_opt_adjust_rate)
        self.min_pin_opt_adjust_rate = 1.0 / float(max_pin_opt_adjust_rate)
        self.area_adjust_stop_ratio = float(area_adjust_stop_ratio)
        self.route_area_adjust_stop_ratio = float(route_area_adjust_stop_ratio)
        self.pin_area_adjust_stop_ratio = float(pin_area_adjust_stop_ratio)
        self.unit_pin_capacity = float(unit_pin_capacity)

    def __call__(self, pos, node_size_x, node_size_y, pin_offset_x, pin_offset_y,
                 target_density, resource_areas, route_utilization_map, pin_utilization_map):
        N = self.num_movable_nodes
        num_nodes = node_size_x.shape[0]
        num_physical = num_nodes - self.num_filler_nodes
        n_lut_f = int(self.filler_start_map[1])
        n_fl_f = int(self.filler_start_map[2])
        n_flop_f = n_fl_f - n_lut_f
        half = self.total_place_area / 2.0

        n_pad, rows, block_rows = _node_layout(N)

        def pad1d(a):
            a = jnp.asarray(a, jnp.float32)
            return jnp.pad(a, (0, n_pad - a.shape[0]))

        x_m = pos[:N]
        y_m = pos[num_nodes:num_nodes + N]
        sx_m = node_size_x[:N]
        sy_m = node_size_y[:N]
        sx_f = node_size_x[num_physical:num_physical + n_fl_f]
        sy_f = node_size_y[num_physical:num_physical + n_fl_f]

        x_p = pad1d(x_m)
        y_p = pad1d(y_m)
        sx_p = pad1d(sx_m)
        sy_p = pad1d(sy_m)
        res_p = pad1d(resource_areas[:N])
        pw_p = pad1d(self.pin_weights[:N])
        lut_p = pad1d(self.lut_mask[:N])
        flop_p = pad1d(self.flop_mask[:N])

        row = lambda a: a.reshape(1, n_pad)          # lane-dense layout (map kernel)
        grid = lambda a: a.reshape(rows, LANE)       # sublane-dense layout (elementwise kernels)

        # --- fused route + pin optimized areas (Pallas kernel 1, bf16 MXU) -------------
        route_clamp = jnp.clip(route_utilization_map ** self.route_opt_adjust_exponent,
                               self.min_route_opt_adjust_rate, self.max_route_opt_adjust_rate)
        pin_clamp = jnp.clip(pin_utilization_map,
                             self.min_pin_opt_adjust_rate, self.max_pin_opt_adjust_rate)
        route_row, pin_row = fused_node_area(
            row(x_p), row(y_p), row(sx_p), row(sy_p), row(pw_p),
            route_clamp, pin_clamp,
            self.xl, self.yl, self.bin_size_x, self.bin_size_y, self.unit_pin_capacity)

        # --- area increment + fused reductions (Pallas kernel 2) ------------------------
        inc_g, sums = compute_area_increment(
            grid(sx_p), grid(sy_p), grid(res_p),
            route_row.reshape(rows, LANE), pin_row.reshape(rows, LANE),
            grid(lut_p), grid(flop_p), block_rows)
        # TODO(synk): num_ccNodes > 0 clamp(area_increment, max=3.0) path not exercised.
        old_lut_sum = sums[0]
        old_flop_sum = sums[1]
        inc_lut_sum = sums[2]
        inc_flop_sum = sums[3]
        res_excess = sums[4]
        route_excess = sums[5]
        pin_excess = sums[6]

        old_filler_lut_sum = jnp.sum(sx_f[:n_lut_f] * sy_f[:n_lut_f])
        old_filler_flop_sum = jnp.sum(sx_f[n_lut_f:] * sy_f[n_lut_f:])
        old_filler_sum = old_filler_lut_sum + old_filler_flop_sum

        def safe_div(a, b):
            return jnp.where(b > 0.0, a / jnp.maximum(b, 1e-12), 0.0)

        s_lut = jnp.clip(safe_div(half - old_lut_sum, inc_lut_sum), 0.0, 1.0)
        s_flop = jnp.clip(safe_div(half - old_flop_sum, inc_flop_sum), 0.0, 1.0)
        # TODO(synk): num_mlab_nodes > 0 scale-factor / filler override path not exercised.

        inc_sum = inc_lut_sum * s_lut + inc_flop_sum * s_flop
        old_sum = old_lut_sum + old_flop_sum
        new_sum = old_sum + inc_sum
        inc_ratio = safe_div(inc_sum, old_sum)

        adj_res = safe_div(res_excess, old_sum) > self.route_area_adjust_stop_ratio
        adj_route = safe_div(route_excess, old_sum) > self.route_area_adjust_stop_ratio
        adj_pin = safe_div(pin_excess, old_sum) > self.pin_area_adjust_stop_ratio
        adj_area = ((inc_ratio > self.area_adjust_stop_ratio)
                    & (adj_res | adj_route | adj_pin)
                    & (old_filler_sum > 0.0))

        # --- new movable sizes + gated inflation ratio (Pallas kernel 3) ----------------
        scalars = jnp.stack([s_lut, s_flop, adj_area.astype(jnp.float32)])
        nsx_g, nsy_g, ratio_g = apply_scale(scalars, grid(sx_p), grid(sy_p), inc_g,
                                            grid(lut_p), grid(flop_p), block_rows)
        sx_m_out = nsx_g.reshape(-1)[:N]
        sy_m_out = nsy_g.reshape(-1)[:N]
        ratio = ratio_g.reshape(-1)[:N]              # already 1.0 when adjust flag is false

        # --- filler resizing -------------------------------------------------------------
        over = (new_sum + old_filler_sum) > self.total_place_area
        new_lut_sum = old_lut_sum + inc_lut_sum * s_lut
        new_flop_sum = old_flop_sum + inc_flop_sum * s_flop
        lut_fill_len = jnp.sqrt(jnp.maximum(half - new_lut_sum, 0.0) / max(n_lut_f, 1))
        flop_fill_len = jnp.sqrt(jnp.maximum(half - new_flop_sum, 0.0) / max(n_flop_f, 1))
        fill_idx = jnp.arange(n_fl_f)
        new_fill_len = jnp.where(fill_idx < n_lut_f, lut_fill_len, flop_fill_len)
        use_new_fill = adj_area & over
        sx_f_out = jnp.where(use_new_fill, new_fill_len, sx_f)
        sy_f_out = jnp.where(use_new_fill, new_fill_len, sy_f)

        node_size_x_out = node_size_x.at[:N].set(sx_m_out)
        node_size_x_out = node_size_x_out.at[num_physical:num_physical + n_fl_f].set(sx_f_out)
        node_size_y_out = node_size_y.at[:N].set(sy_m_out)
        node_size_y_out = node_size_y_out.at[num_physical:num_physical + n_fl_f].set(sy_f_out)

        # --- update_pin_offset -----------------------------------------------------------
        # TODO(synk): the C++ per-node scatter over flat_node2pin_map is expressed here as a
        # per-pin gather (jnp.take) in plain JAX glue rather than a Pallas kernel.
        ratio_nodes = jnp.ones((num_nodes,), jnp.float32).at[:N].set(ratio)
        per_pin_ratio = jnp.take(ratio_nodes, self.pin2node_map)
        pin_offset_x_out = pin_offset_x * per_pin_ratio
        pin_offset_y_out = pin_offset_y * per_pin_ratio

        return ((adj_area, adj_res, adj_route, adj_pin),
                node_size_x_out, node_size_y_out, pin_offset_x_out, pin_offset_y_out)


# ----------------------------------------------------------------------------- demo
if __name__ == "__main__":
    key = jax.random.PRNGKey(0)
    ks = jax.random.split(key, 10)

    # small synthetic placement instance
    N_mov, N_fixed = 64, 8
    n_lut_fill, n_flop_fill = 16, 16
    N_fill = n_lut_fill + n_flop_fill
    num_nodes = N_mov + N_fixed + N_fill            # 104
    filler_start_map = np.array([0, n_lut_fill, N_fill], dtype=np.int64)

    xl, yl, xh, yh = 0.0, 0.0, 16.0, 16.0
    nbx = nby = 16

    pos_x = jax.random.uniform(ks[0], (num_nodes,), minval=0.0, maxval=14.0)
    pos_y = jax.random.uniform(ks[1], (num_nodes,), minval=0.0, maxval=14.0)
    pos = jnp.concatenate([pos_x, pos_y]).astype(jnp.float32)

    node_size_x = jax.random.uniform(ks[2], (num_nodes,), minval=0.5, maxval=1.5).astype(jnp.float32)
    node_size_y = jax.random.uniform(ks[3], (num_nodes,), minval=0.5, maxval=1.5).astype(jnp.float32)
    resource_areas = jax.random.uniform(ks[4], (N_mov,), minval=0.5, maxval=4.0).astype(jnp.float32)
    route_utilization_map = jax.random.uniform(ks[5], (nbx, nby), minval=0.5, maxval=2.0).astype(jnp.float32)
    pin_utilization_map = jax.random.uniform(ks[6], (nbx, nby), minval=0.5, maxval=2.0).astype(jnp.float32)

    # deterministic lut / flop partition of movable nodes
    lut_mask = (np.arange(N_mov) % 2 == 0).astype(np.float32)
    flop_mask = 1.0 - lut_mask

    # pin connectivity: 3 pins per node, identity flat map
    pins_per_node = 3
    num_pins = num_nodes * pins_per_node
    flat_node2pin_start_map = np.arange(num_nodes + 1, dtype=np.int32) * pins_per_node
    flat_node2pin_map = np.arange(num_pins, dtype=np.int32)
    pin_weights = (flat_node2pin_start_map[1:N_mov + 1]
                   - flat_node2pin_start_map[:N_mov]).astype(np.float32)
    pin2node = np.zeros(num_pins, dtype=np.int32)
    for i in range(num_nodes):
        pin2node[flat_node2pin_map[flat_node2pin_start_map[i]:flat_node2pin_start_map[i + 1]]] = i

    pin_offset_x = jax.random.uniform(ks[7], (num_pins,), minval=-0.5, maxval=0.5).astype(jnp.float32)
    pin_offset_y = jax.random.uniform(ks[8], (num_pins,), minval=-0.5, maxval=0.5).astype(jnp.float32)

    adjust = AdjustNodeAreaTPU(
        xl=xl, yl=yl, xh=xh, yh=yh, num_bins_x=nbx, num_bins_y=nby,
        num_movable_nodes=N_mov, num_filler_nodes=N_fill,
        filler_start_map=filler_start_map,
        lut_mask=lut_mask, flop_mask=flop_mask,
        pin_weights=pin_weights, pin2node_map=pin2node,
        total_place_area=150.0, total_whitespace_area=50.0,
        max_route_opt_adjust_rate=2.5, route_opt_adjust_exponent=2.5,
        max_pin_opt_adjust_rate=2.5,
        area_adjust_stop_ratio=0.01, route_area_adjust_stop_ratio=0.01,
        pin_area_adjust_stop_ratio=0.05, unit_pin_capacity=0.5)

    out = adjust(pos, node_size_x, node_size_y, pin_offset_x, pin_offset_y,
                 target_density=1.0, resource_areas=resource_areas,
                 route_utilization_map=route_utilization_map,
                 pin_utilization_map=pin_utilization_map)
    out = jax.block_until_ready(out)

    (flags, nsx, nsy, pox, poy) = out
    assert bool(jnp.all(jnp.isfinite(nsx))) and bool(jnp.all(jnp.isfinite(nsy)))
    assert bool(jnp.all(jnp.isfinite(pox))) and bool(jnp.all(jnp.isfinite(poy)))
    print("KERNEL_OK")
</pallas_src>

<mosaic_0001>
module attributes {stable_mosaic.version = 11 : i64} {
  func.func @_fused_node_area_kernel(%arg0: i32, %arg1: memref<1x512xf32, #tpu.memory_space<vmem>>, %arg2: memref<1x512xf32, #tpu.memory_space<vmem>>, %arg3: memref<1x512xf32, #tpu.memory_space<vmem>>, %arg4: memref<1x512xf32, #tpu.memory_space<vmem>>, %arg5: memref<1x512xf32, #tpu.memory_space<vmem>>, %arg6: memref<32x128xbf16, #tpu.memory_space<vmem>>, %arg7: memref<1x512xf32, #tpu.memory_space<vmem>>, %arg8: memref<1x512xf32, #tpu.memory_space<vmem>>) attributes {dimension_semantics = [#tpu.dimension_semantics<parallel>], iteration_bounds = array<i64: 2>, scalar_prefetch = 0 : i64, scratch_operands = 0 : i64, tpu.core_type = #tpu.core_type<tc>, window_params = [{transform_indices = @transform_0, window_bounds = array<i64: 1, 512>}, {transform_indices = @transform_1, window_bounds = array<i64: 1, 512>}, {transform_indices = @transform_2, window_bounds = array<i64: 1, 512>}, {transform_indices = @transform_3, window_bounds = array<i64: 1, 512>}, {transform_indices = @transform_4, window_bounds = array<i64: 1, 512>}, {pipeline_mode = #tpu.pipeline_mode<synchronous>, transform_indices = @transform_5, window_bounds = array<i64: 32, 128>}, {transform_indices = @transform_6, window_bounds = array<i64: 1, 512>}, {transform_indices = @transform_7, window_bounds = array<i64: 1, 512>}]} {
    %c0 = arith.constant 0 : index
    %c0_0 = arith.constant 0 : index
    %0 = vector.load %arg1[%c0, %c0_0] : memref<1x512xf32, #tpu.memory_space<vmem>>, vector<1x512xf32>
    %c0_1 = arith.constant 0 : index
    %c0_2 = arith.constant 0 : index
    %1 = vector.load %arg2[%c0_1, %c0_2] : memref<1x512xf32, #tpu.memory_space<vmem>>, vector<1x512xf32>
    %c0_3 = arith.constant 0 : index
    %c0_4 = arith.constant 0 : index
    %2 = vector.load %arg3[%c0_3, %c0_4] : memref<1x512xf32, #tpu.memory_space<vmem>>, vector<1x512xf32>
    %c0_5 = arith.constant 0 : index
    %c0_6 = arith.constant 0 : index
    %3 = vector.load %arg4[%c0_5, %c0_6] : memref<1x512xf32, #tpu.memory_space<vmem>>, vector<1x512xf32>
    %4 = arith.addf %0, %2 : vector<1x512xf32>
    %5 = arith.addf %1, %3 : vector<1x512xf32>
    %6 = tpu.iota {dimensions = array<i32: 0>} : vector<16x1xi32>
    %7 = arith.sitofp %6 : vector<16x1xi32> to vector<16x1xf32>
    %cst = arith.constant 1.000000e+00 : f32
    %8 = vector.broadcast %cst : f32 to vector<16x1xf32>
    %9 = arith.mulf %7, %8 : vector<16x1xf32>
    %cst_7 = arith.constant 0.000000e+00 : f32
    %10 = vector.broadcast %cst_7 : f32 to vector<16x1xf32>
    %11 = arith.addf %10, %9 : vector<16x1xf32>
    %cst_8 = arith.constant 1.000000e+00 : f32
    %12 = vector.broadcast %cst_8 : f32 to vector<16x1xf32>
    %13 = arith.addf %11, %12 : vector<16x1xf32>
    %14 = vector.broadcast %4 : vector<1x512xf32> to vector<16x512xf32>
    %15 = vector.broadcast %13 : vector<16x1xf32> to vector<16x512xf32>
    %16 = arith.minimumf %14, %15 : vector<16x512xf32>
    %17 = vector.broadcast %0 : vector<1x512xf32> to vector<16x512xf32>
    %18 = vector.broadcast %11 : vector<16x1xf32> to vector<16x512xf32>
    %19 = arith.maximumf %17, %18 : vector<16x512xf32>
    %20 = arith.subf %16, %19 : vector<16x512xf32>
    %cst_9 = arith.constant 0.000000e+00 : f32
    %21 = vector.broadcast %cst_9 : f32 to vector<16x512xf32>
    %22 = arith.maximumf %20, %21 : vector<16x512xf32>
    %23 = tpu.iota {dimensions = array<i32: 0>} : vector<128x1xi32>
    %24 = arith.sitofp %23 : vector<128x1xi32> to vector<128x1xf32>
    %cst_10 = arith.constant 1.000000e+00 : f32
    %25 = vector.broadcast %cst_10 : f32 to vector<128x1xf32>
    %26 = arith.mulf %24, %25 : vector<128x1xf32>
    %cst_11 = arith.constant 0.000000e+00 : f32
    %27 = vector.broadcast %cst_11 : f32 to vector<128x1xf32>
    %28 = arith.addf %27, %26 : vector<128x1xf32>
    %cst_12 = arith.constant 1.000000e+00 : f32
    %29 = vector.broadcast %cst_12 : f32 to vector<128x1xf32>
    %30 = arith.addf %28, %29 : vector<128x1xf32>
    %31 = vector.broadcast %5 : vector<1x512xf32> to vector<128x512xf32>
    %32 = vector.broadcast %30 : vector<128x1xf32> to vector<128x512xf32>
    %33 = arith.minimumf %31, %32 : vector<128x512xf32>
    %34 = vector.broadcast %1 : vector<1x512xf32> to vector<128x512xf32>
    %35 = vector.broadcast %28 : vector<128x1xf32> to vector<128x512xf32>
    %36 = arith.maximumf %34, %35 : vector<128x512xf32>
    %37 = arith.subf %33, %36 : vector<128x512xf32>
    %cst_13 = arith.constant 0.000000e+00 : f32
    %38 = vector.broadcast %cst_13 : f32 to vector<128x512xf32>
    %39 = arith.maximumf %37, %38 : vector<128x512xf32>
    %c0_14 = arith.constant 0 : index
    %c0_15 = arith.constant 0 : index
    %40 = vector.load %arg6[%c0_14, %c0_15] : memref<32x128xbf16, #tpu.memory_space<vmem>>, vector<32x128xbf16>
    %41 = arith.truncf %39 : vector<128x512xf32> to vector<128x512xbf16>
    %cst_16 = arith.constant dense<0.000000e+00> : vector<32x512xf32>
    %42 = tpu.matmul %40, %41, %cst_16 {dimension_numbers = #tpu.dot_dimension_numbers<[1], [0], [0], [1], [0, 0, 1, 1], [], []>} : vector<32x128xbf16>, vector<128x512xbf16>, vector<32x512xf32> -> vector<32x512xf32>
    %43 = vector.extract_strided_slice %42 {offsets = [0, 0], sizes = [16, 512], strides = [1, 1]} : vector<32x512xf32> to vector<16x512xf32>
    %44 = arith.mulf %22, %43 : vector<16x512xf32>
    %cst_17 = arith.constant dense<0.000000e+00> : vector<512xf32>
    %45 = vector.multi_reduction <add>, %44, %cst_17 [0] : vector<16x512xf32> to vector<512xf32>
    %46 = vector.shape_cast %45 : vector<512xf32> to vector<1x512xf32>
    %47 = vector.extract_strided_slice %42 {offsets = [16, 0], sizes = [16, 512], strides = [1, 1]} : vector<32x512xf32> to vector<16x512xf32>
    %48 = arith.mulf %22, %47 : vector<16x512xf32>
    %cst_18 = arith.constant dense<0.000000e+00> : vector<512xf32>
    %49 = vector.multi_reduction <add>, %48, %cst_18 [0] : vector<16x512xf32> to vector<512xf32>
    %50 = vector.shape_cast %49 : vector<512xf32> to vector<1x512xf32>
    %c0_19 = arith.constant 0 : index
    %c0_20 = arith.constant 0 : index
    %51 = vector.load %arg7[%c0_19, %c0_20] : memref<1x512xf32, #tpu.memory_space<vmem>>, vector<1x512xf32>
    tpu.vector_store %arg7[%c0_19, %c0_20], %46 {strides = array<i32>} : memref<1x512xf32, #tpu.memory_space<vmem>>, vector<1x512xf32>,
    %52 = arith.mulf %2, %3 : vector<1x512xf32>
    %cst_21 = arith.constant 0.000000e+00 : f32
    %53 = vector.broadcast %cst_21 : f32 to vector<1x512xf32>
    %54 = arith.cmpf ogt, %52, %53 : vector<1x512xf32>
    %c0_22 = arith.constant 0 : index
    %c0_23 = arith.constant 0 : index
    %55 = vector.load %arg5[%c0_22, %c0_23] : memref<1x512xf32, #tpu.memory_space<vmem>>, vector<1x512xf32>
    %56 = arith.mulf %50, %55 : vector<1x512xf32>
    %cst_24 = arith.constant 2.000000e+00 : f32
    %57 = vector.broadcast %cst_24 : f32 to vector<1x512xf32>
    %58 = arith.mulf %56, %57 : vector<1x512xf32>
    %59 = arith.divf %58, %52 : vector<1x512xf32>
    %cst_25 = arith.constant 0.000000e+00 : f32
    %60 = vector.broadcast %cst_25 : f32 to vector<1x512xf32>
    %61 = arith.select %54, %59, %60 : vector<1x512xi1>, vector<1x512xf32>
    %c0_26 = arith.constant 0 : index
    %c0_27 = arith.constant 0 : index
    %62 = vector.load %arg8[%c0_26, %c0_27] : memref<1x512xf32, #tpu.memory_space<vmem>>, vector<1x512xf32>
    tpu.vector_store %arg8[%c0_26, %c0_27], %61 {strides = array<i32>} : memref<1x512xf32, #tpu.memory_space<vmem>>, vector<1x512xf32>,
    return
  }
  func.func @transform_0(%arg0: i32) -> (i32, i32) {
    %c0_i32 = arith.constant 0 : i32
    %c0_i32_0 = arith.constant 0 : i32
    return %c0_i32, %arg0 : i32, i32
  }
  func.func @transform_1(%arg0: i32) -> (i32, i32) {
    %c0_i32 = arith.constant 0 : i32
    %c0_i32_0 = arith.constant 0 : i32
    return %c0_i32, %arg0 : i32, i32
  }
  func.func @transform_2(%arg0: i32) -> (i32, i32) {
    %c0_i32 = arith.constant 0 : i32
    %c0_i32_0 = arith.constant 0 : i32
    return %c0_i32, %arg0 : i32, i32
  }
  func.func @transform_3(%arg0: i32) -> (i32, i32) {
    %c0_i32 = arith.constant 0 : i32
    %c0_i32_0 = arith.constant 0 : i32
    return %c0_i32, %arg0 : i32, i32
  }
  func.func @transform_4(%arg0: i32) -> (i32, i32) {
    %c0_i32 = arith.constant 0 : i32
    %c0_i32_0 = arith.constant 0 : i32
    return %c0_i32, %arg0 : i32, i32
  }
  func.func @transform_5(%arg0: i32) -> (i32, i32) {
    %c0_i32 = arith.constant 0 : i32
    %c0_i32_0 = arith.constant 0 : i32
    %c0_i32_1 = arith.constant 0 : i32
    return %c0_i32, %c0_i32_0 : i32, i32
  }
  func.func @transform_6(%arg0: i32) -> (i32, i32) {
    %c0_i32 = arith.constant 0 : i32
    %c0_i32_0 = arith.constant 0 : i32
    return %c0_i32, %arg0 : i32, i32
  }
  func.func @transform_7(%arg0: i32) -> (i32, i32) {
    %c0_i32 = arith.constant 0 : i32
    %c0_i32_0 = arith.constant 0 : i32
    return %c0_i32, %arg0 : i32, i32
  }
}

</mosaic_0001>

<bundles_post_ra>
// kernel: tpu_custom_call.1
= control target key start
LH: loop header
LB: loop body
LE: loop exit
PB: predicated region body
PF: predicated region fallthrough
CT: control target
= control target key end

     0   :  { %s2621_s0 = inlined_call_operand.hbm [shape: f32[1,1024], index: 0, kind: input, shape index: {}]   ;;  %s2622_s1 = inlined_call_operand.hbm [shape: f32[1,1024], index: 1, kind: input, shape index: {}]   ;;  %s2623_s2 = inlined_call_operand.hbm [shape: f32[1,1024], index: 2, kind: input, shape index: {}]   ;;  %s2624_s3 = inlined_call_operand.hbm [shape: f32[1,1024], index: 3, kind: input, shape index: {}]   ;;  %s2625_s4 = inlined_call_operand.hbm [shape: f32[1,1024], index: 4, kind: input, shape index: {}]   ;;  %s2626_s5 = inlined_call_operand.hbm [shape: bf16[32,128], index: 5, kind: input, shape index: {}]   ;;  %s2627_s6 = inlined_call_operand.hbm [shape: f32[1,1024], index: 6, kind: output, shape index: {0}]   ;;  %s2628_s7 = inlined_call_operand.hbm [shape: f32[1,1024], index: 7, kind: output, shape index: {1}]  }
   0x1   :  { %2638 = sst [smem:[#allocation28_spill]] %s2622_s1 }
   0x2   :  { %2639 = sst [smem:[#allocation29_spill]] %s2624_s3 }
   0x3   :  { %2640 = sst [smem:[#allocation30_spill]] %s2626_s5 }
   0x4   :  { %2641 = sst [smem:[#allocation31_spill]] %s2628_s7 }
   0x5   :  { %13 = vsyncpa [#allocation3], 0 }
   0x6   :  { %15 = vsyncpa [#allocation3 + $0x1], 0 }
   0x7   :  { %16 = vsyncpa [#allocation6], 0 }
   0x8   :  { %18 = vsyncpa [#allocation6 + $0x1], 0 }
   0x9   :  { %19 = vsyncpa [#allocation9], 0 }
   0xa   :  { %21 = vsyncpa [#allocation9 + $0x1], 0 }
   0xb   :  { %22 = vsyncpa [#allocation12], 0 }
   0xc   :  { %23 = vsyncpa [#allocation4], 0 }
   0xd   :  { %25 = vsyncpa [#allocation4 + $0x1], 0 }
   0xe   :  { %26 = vsyncpa [#allocation15], 0 }
   0xf   :  { %28 = vsyncpa [#allocation15 + $0x1], 0  ;;  %s1893_s24 = smov 0   ;;  %s1895_s25 = smov 0  }
  0x10   :  { %s1897_s26 = smov 0   ;;  %s1899_s27 = smov 0  }
  0x11 LB: > { %2642 = sst [smem:[#allocation22_spill]] %s1836_s24  ;;  %s1914_s28 = sadd.s32 1, %s1848_s27   ;;  %s1848_s27 = sphi %s1899_s27, %s2678_s27   ;;  %s1844_s26 = sphi %s1897_s26, %s2682_s26   ;;  %s1840_s25 = sphi %s1895_s25, %s2681_s25   ;;  %s1836_s24 = sphi %s1893_s24, %s2680_s24  }
  0x12   : > { %2643 = sst [smem:[#allocation23_spill]] %s1848_s27  ;;  %s41_s29 = sadd.s32 1, %s1844_s26 }
  0x13   : > { %2644 = sst [smem:[#allocation24_spill]] %s1914_s28  ;;  %s38_s30 = ssub.s32 %s1848_s27, %s1914_s28 }
  0x14   : > { %p48_p0 = scmp.ne.s32.totalorder %s1844_s26, %s1840_s25  ;;  %p39_p1 = scmp.eq.s32.totalorder %s38_s30, 0 }
  0x15   : > { %p49_p2 = scmp.eq.s32.totalorder %s1848_s27, 0  ;;  %p1512_p4 = scmp.lt.s32.totalorder %s1848_s27, 2 }
  0x16   : > { %s1925_s8 = scalar_select %p39_p1, %s1844_s26, %s41_s29  }
  0x17   : > { %p50_p5 = por %p49_p2, %p48_p0  ;;  %s2629_s9 = sand.u32 1, %s1844_s26  }
  0x18   : > { %2645 = sst [smem:[#allocation25_spill]] %s1925_s8  ;;  %s1933_s10 = sshll.u32 %s2629_s9, 2 }
  0x19   : > { %s1936_s11 = sshll.u32 %s1848_s27, 2  ;;  %p1938_p6 = pnand %p1512_p4, %p50_p5 }
  0x1a   : > { %s288_s13 = sand.u32 1, %s1848_s27   ;;  %s2647_s1 = sld [smem:[#allocation28_spill]] }
  0x1b   : > { %s292_s18 = scalar_lea.vmem [#allocation5], %s1933_s10  ;;  %s1948_s20 = scalar_lea.sflag [#allocation6], %s288_s13 }
  0x1c   : > { %s300_s19 = sshll.u32 %s292_s18, 4  ;;  %p1952_p8 = pneg %p1938_p6  ;;  %s301_s19 = int_to_ptr.vmem [resolvable:$true] %s300_s19 }
  0x20   : > { %s296_s16 = scalar_lea.hbm %s2647_s1, %s1936_s11  ;;  %s1565_s14 = scalar_lea.hbm %s2647_s1, 8 }
  0x21   : > { %s298_s17 = sshll.u32 %s296_s16, 4  ;;  %s299_s17 = int_to_ptr.hbm [resolvable:$true] %s298_s17 }
  0x22   : > { %s1558_s21 = sshra.s32 %s299_s17, 4  ;;  %s1559_s21 = int_to_ptr.hbm [resolvable:$true] %s1558_s21 }
  0x23   : > { %s1560_s22 = scalar_lea.hbm %s1559_s21, 4  ;;  %p1566_p11 = scmp.lt.s32.totalorder %s1559_s21, %s2647_s1 }
  0x24   : > { %p1561_p7 = scmp.ne.s32.totalorder %s1559_s21, %s1560_s22  ;;  %p1567_p12 = scmp.lt.s32.totalorder %s1565_s14, %s1560_s22 }
  0x26   : > { %p1563_p9 = pnand %p1952_p8, %p1561_p7  ;;  %p1568_p13 = por %p1567_p12, %p1566_p11 }
  0x28   : > { %p1564_p10 = pneg %p1563_p9 }
  0x2a   : > { %p1569_p1 = pnand %p1568_p13, %p1564_p10 }
  0x2c   : > { %1572 = shalt.err (!%p1569_p1)
}
  0x2d   : > { %1494 = dma.hbm_to_vmem [thread:$0]  (!%p1938_p6), %s299_s17, 64, %s301_s19, %s1948_s20  }
  0x2e   : > { %s2649_s3 = sld [smem:[#allocation29_spill]]  ;;  %s330_s30 = scalar_lea.vmem [#allocation8], %s1933_s10 }
  0x2f   : > { %s338_s8 = sshll.u32 %s330_s30, 4  ;;  %s1972_s21 = scalar_lea.sflag [#allocation9], %s288_s13  ;;  %s339_s8 = int_to_ptr.vmem [resolvable:$true] %s338_s8 }
  0x34   : > { %s334_s29 = scalar_lea.hbm %s2649_s3, %s1936_s11  ;;  %s1595_s19 = scalar_lea.hbm %s2649_s3, 8 }
  0x35   : > { %s336_s28 = sshll.u32 %s334_s29, 4  ;;  %s337_s28 = int_to_ptr.hbm [resolvable:$true] %s336_s28 }
  0x36   : > { %s1588_s22 = sshra.s32 %s337_s28, 4  ;;  %s1589_s22 = int_to_ptr.hbm [resolvable:$true] %s1588_s22 }
  0x37   : > { %s1590_s14 = scalar_lea.hbm %s1589_s22, 4  ;;  %p1596_p7 = scmp.lt.s32.totalorder %s1589_s22, %s2649_s3 }
  0x38   : > { %p1591_p2 = scmp.ne.s32.totalorder %s1589_s22, %s1590_s14  ;;  %p1597_p9 = scmp.lt.s32.totalorder %s1595_s19, %s1590_s14 }
  0x3a   : > { %p1593_p4 = pnand %p1591_p2, %p1952_p8  ;;  %p1598_p10 = por %p1597_p9, %p1596_p7 }
  0x3c   : > { %p1594_p5 = pneg %p1593_p4 }
  0x3e   : > { %p1599_p11 = pnand %p1598_p10, %p1594_p5 }
  0x40   : > { %1602 = shalt.err (!%p1599_p11)
}
  0x41   : > { %1500 = dma.hbm_to_vmem [thread:$0]  (!%p1938_p6), %s337_s28, 64, %s339_s8, %s1972_s21  }
  0x42   : > { %s1986_s13 = sadd.s32 4294967295, %s1848_s27   ;;  %s1427_s18 = sadd.s32 4294967294, %s1848_s27  }
  0x43   : > { %p54_p12 = scmp.ne.s32.totalorder %s1840_s25, %s1836_s24  ;;  %p55_p13 = scmp.eq.s32.totalorder %s1986_s13, 0 }
  0x44   : > { %p203_p1 = scmp.eq.s32.totalorder %s1986_s13, 1  ;;  %p209_p2 = scmp.eq.s32.totalorder %s1427_s18, 1 }
  0x45   : > { %p1428_p4 = scmp.ge.s32.totalorder %s1848_s27, 1  ;;  %p1996_p5 = por %p55_p13, %p54_p12 }
  0x46   : > { %p2003_p7 = por %p203_p1, %p48_p0  ;;  %p2007_p9 = por %p209_p2, %p54_p12 }
  0x47   : > { %p242_p10 = scmp.lt.s32.totalorder %s1848_s27, 3  ;;  %s2655_s5 = sld [smem:[#allocation30_spill]] }
  0x48   : > { %s2651_s28 = scalar_select %p2003_p7, 1, 0 }
  0x49   : > { %s2653_s8 = scalar_select %p2007_p9, 1, 0 }
  0x4a   : > { %2652 = sst [smem:[#allocation26_spill]] %s2651_s28  ;;  %p2015_p11 = pnand %p1428_p4, %p242_p10 }
  0x4b   : > { %2654 = sst [smem:[#allocation27_spill]] %s2653_s8  ;;  %s1850_s17 = smov [#allocation11]  }
  0x4c   : > { %p1484_p0 = pneg %p2015_p11  ;;  %s255_s19 = sshll.u32 %s1850_s17, 4  ;;  %s256_s19 = int_to_ptr.vmem [resolvable:$true] %s255_s19 }
  0x4d   : > { %s253_s14 = sshll.u32 %s2655_s5, 4  ;;  %s277_s18 = scalar_lea.hbm %s2621_s0, %s1936_s11  ;;  %s254_s14 = int_to_ptr.hbm [resolvable:$true] %s253_s14 }
  0x4e   : > { %p1485_p12 = pnand %p1484_p0, %p55_p13  ;;  %s279_s30 = sshll.u32 %s277_s18, 4  ;;  %s280_s30 = int_to_ptr.hbm [resolvable:$true] %s279_s30 }
  0x4f   : > { %s1851_s22 = smov 64   ;;  %s1852_s1 = smov 4  }
  0x50   : > { %1487 = dma.hbm_to_vmem [thread:$0]  (!%p1485_p12), %s254_s14, 256, %s256_s19, [#allocation12], %s1851_s22, %s1851_s22, %s1852_s1  }
  0x51   : > { %s273_s3 = scalar_lea.vmem [#allocation2], %s1933_s10  ;;  %s2657_s27 = sand.u32 1, %s1844_s26  }
  0x52   : > { %s281_s5 = sshll.u32 %s273_s3, 4  ;;  %s270_s8 = scalar_lea.sflag [#allocation3], %s2657_s27  ;;  %s282_s5 = int_to_ptr.vmem [resolvable:$true] %s281_s5 }
  0x53   : > { %s1648_s24 = sshra.s32 %s280_s30, 4  ;;  %s1655_s16 = scalar_lea.hbm %s2621_s0, 8  ;;  %s1649_s24 = int_to_ptr.hbm [resolvable:$true] %s1648_s24 }
  0x54   : > { %s1650_s17 = scalar_lea.hbm %s1649_s24, 4  ;;  %p1656_p10 = scmp.lt.s32.totalorder %s1649_s24, %s2621_s0 }
  0x55   : > { %p1651_p1 = scmp.ne.s32.totalorder %s1649_s24, %s1650_s17  ;;  %p1657_p0 = scmp.lt.s32.totalorder %s1655_s16, %s1650_s17 }
  0x57   : > { %p1653_p2 = pnand %p1651_p1, %p1952_p8  ;;  %p1658_p12 = por %p1657_p0, %p1656_p10 }
  0x59   : > { %p1654_p4 = pneg %p1653_p2 }
  0x5b   : > { %p1659_p3 = pnand %p1658_p12, %p1654_p4 }
  0x5d   : > { %1662 = shalt.err (!%p1659_p3)
}
  0x5e   : > { %1491 = dma.hbm_to_vmem [thread:$0]  (!%p1938_p6), %s280_s30, 64, %s282_s5, %s270_s8  }
  0x5f   : > { %s315_s27 = scalar_lea.hbm %s2623_s2, %s1936_s11  ;;  %s311_s7 = scalar_lea.vmem [#allocation7], %s1933_s10 }
  0x60   : > { %s319_s14 = sshll.u32 %s311_s7, 4  ;;  %s317_s19 = sshll.u32 %s315_s27, 4  ;;  %s320_s14 = int_to_ptr.vmem [resolvable:$true] %s319_s14  ;;  %s318_s19 = int_to_ptr.hbm [resolvable:$true] %s317_s19 }
  0x61   : > { %s1678_s24 = sshra.s32 %s318_s19, 4  ;;  %s1685_s5 = scalar_lea.hbm %s2623_s2, 8  ;;  %s1679_s24 = int_to_ptr.hbm [resolvable:$true] %s1678_s24 }
  0x62   : > { %s1680_s28 = scalar_lea.hbm %s1679_s24, 4  ;;  %p1686_p4 = scmp.lt.s32.totalorder %s1679_s24, %s2623_s2 }
  0x63   : > { %p1681_p1 = scmp.ne.s32.totalorder %s1679_s24, %s1680_s28  ;;  %p1687_p10 = scmp.lt.s32.totalorder %s1685_s5, %s1680_s28 }
  0x65   : > { %p1683_p3 = pnand %p1681_p1, %p1952_p8  ;;  %p1688_p0 = por %p1687_p10, %p1686_p4 }
  0x67   : > { %p1684_p2 = pneg %p1683_p3 }
  0x69   : > { %p1689_p12 = pnand %p1688_p0, %p1684_p2 }
  0x6b   : > { %1692 = shalt.err (!%p1689_p12)
}
  0x6c   : > { %1497 = dma.hbm_to_vmem [thread:$0]  (!%p1938_p6), %s318_s19, 64, %s320_s14, %s1948_s20  }
  0x6d   : > { %s353_s18 = scalar_lea.hbm %s2625_s4, %s1936_s11  ;;  %s349_s1 = scalar_lea.vmem [#allocation10], %s1933_s10 }
  0x6e   : > { %s357_s3 = sshll.u32 %s349_s1, 4  ;;  %s355_s27 = sshll.u32 %s353_s18, 4  ;;  %s358_s3 = int_to_ptr.vmem [resolvable:$true] %s357_s3  ;;  %s356_s27 = int_to_ptr.hbm [resolvable:$true] %s355_s27 }
  0x6f   : > { %s1708_s7 = sshra.s32 %s356_s27, 4  ;;  %s1715_s20 = scalar_lea.hbm %s2625_s4, 8  ;;  %s1709_s7 = int_to_ptr.hbm [resolvable:$true] %s1708_s7 }
  0x70   : > { %s1710_s24 = scalar_lea.hbm %s1709_s7, 4  ;;  %p1716_p4 = scmp.lt.s32.totalorder %s1709_s7, %s2625_s4 }
  0x71   : > { %p1711_p1 = scmp.ne.s32.totalorder %s1709_s7, %s1710_s24  ;;  %p1717_p10 = scmp.lt.s32.totalorder %s1715_s20, %s1710_s24 }
  0x73   : > { %p1713_p3 = pnand %p1711_p1, %p1952_p8  ;;  %p1718_p0 = por %p1717_p10, %p1716_p4 }
  0x75   : > { %p1714_p2 = pneg %p1713_p3 }
  0x77   : > { %p1719_p12 = pnand %p1718_p0, %p1714_p2 }
  0x79   : > { %1722 = shalt.err (!%p1719_p12)
}
  0x7a   : > { %1503 = dma.hbm_to_vmem [thread:$0]  (!%p1938_p6), %s356_s27, 64, %s358_s3, %s1972_s21  }
  0x7b   : > { %366 = sbr.rel (%p2015_p11) target bundleno = 420 (0x1a4), region = 44  ;;  %s2075_s10 = sand.u32 (!%p2015_p11), 1, %s1840_s25  }
  0x7c   : > { %s2078_s11 = sshll.u32 (!%p2015_p11), %s2075_s10, 2  ;;  %s369_s23 = scalar_lea.sflag (!%p2015_p11), [#allocation3], %s2075_s10 }
  0x7d   : > { %s372_s17 = scalar_lea.vmem (!%p2015_p11), [#allocation2], %s2078_s11 }
  0x80   : > { %1811 = dma.done.wait (%p1996_p5), %s369_s23, 64  }
  0x81   : > { %1813 = vsyncadd (%p1996_p5), %s369_s23, 4294967232  ;;  %s378_s12 = sand.u32 1, %s1986_s13   ;;  %s382_s15 = scalar_lea.vmem [#allocation5], %s2078_s11 }
  0x82   : > { %s379_s21 = scalar_lea.sflag [#allocation6], %s378_s12 }
  0x83   : > { %1815 = dma.done.wait (%p1996_p5), %s379_s21, 128  }
  0x84   : > { %1817 = vsyncadd (%p1996_p5), %s379_s21, 4294967168  ;;  %s392_s5 = scalar_lea.vmem [#allocation7], %s2078_s11  ;;  %s399_s8 = scalar_lea.sflag [#allocation9], %s378_s12 }
  0x85   : > { %s402_s30 = scalar_lea.vmem [#allocation8], %s2078_s11 }
  0x86   : > { %1819 = dma.done.wait (%p1996_p5), %s399_s8, 128  }
  0x87   : > { %1821 = vsyncadd (%p1996_p5), %s399_s8, 4294967168  ;;  %s412_s9 = scalar_lea.vmem [#allocation10], %s2078_s11 }
  0x88   : > { %1823 = dma.done.wait (%p55_p13), [#allocation12], 256  }
  0x89   : > { %1825 = vsyncadd (%p55_p13), [#allocation12], 4294967040  ;;  %v487_v0 = vlaneseq  ;;  %v482_v14 = vld [vmem:[%s382_s15] sm:$0xf]  ;;  %v2118_v15 = vld [vmem:[%s402_s30] sm:$0xf] }
  0x8a   : > { %v486_v20 = vadd.f32 %v2118_v15, %v482_v14  ;;  %v2129_v23 = vperm.slane %v482_v14, 0  ;;  %v2131_v24 = vperm.slane %v482_v14, 1  ;;  %v2133_v25 = vperm.slane %v482_v14, 2  ;;  %s1460_s29 = sshll.u32 %s1986_s13, 2  ;;  %s466_s3 = scalar_lea.vmem [#allocation13], %s2078_s11 }
  0x8b   : > { %v2104_v1 = vshrl.u32 %v487_v0, 7  ;;  %v2135_v26 = vperm.slane %v482_v14, 3  ;;  %vm1079_vm0 = vcmask 1040384   ;;  %vm1081_vm1 = vcmask 1042434   ;;  %s2469_s1 = scalar_lea.hbm %s2627_s6, %s1460_s29  ;;  %s2477_s27 = sshll.u32 %s466_s3, 4  ;;  %s1212_s27 = int_to_ptr.vmem [resolvable:$true] %s2477_s27 }
  0x8c   : > { %v2140_v28 = vperm.slane %v486_v20, 0  ;;  %v2144_v31 = vperm.slane %v486_v20, 1  ;;  %v2148_v34 = vperm.slane %v486_v20, 2  ;;  %v2158_v43 = vperm.slane %v486_v20, 3  ;;  %s1213_s7 = sshll.u32 %s2469_s1, 4  ;;  %s1194_s28 = scalar_lea.sflag [#allocation4], %s2075_s10  ;;  %s2496_s7 = int_to_ptr.hbm [resolvable:$true] %s1213_s7 }
  0x8d   : > { %v558_v2 = vadd.s32 112, %v2104_v1  ;;  %v559_v3 = vadd.s32 120, %v2104_v1  ;;  %v556_v4 = vadd.s32 96, %v2104_v1  ;;  %v557_v5 = vadd.s32 104, %v2104_v1  ;;  %s1752_s22 = sshra.s32 %s2496_s7, 4  ;;  %s1758_s23 = scalar_lea.hbm %s2627_s6, 8  ;;  %s1753_s22 = int_to_ptr.hbm [resolvable:$true] %s1752_s22 }
  0x8e   : > { %v554_v6 = vadd.s32 80, %v2104_v1  ;;  %v555_v7 = vadd.s32 88, %v2104_v1  ;;  %v552_v8 = vadd.s32 64, %v2104_v1  ;;  %v553_v9 = vadd.s32 72, %v2104_v1  ;;  %s1754_s20 = scalar_lea.hbm %s1753_s22, 4  ;;  %p1759_p5 = scmp.lt.s32.totalorder %s1753_s22, %s2627_s6 }
  0x8f   : > { %v572_v10 = vcvt.s32.f32 %v558_v2  ;;  %v573_v11 = vcvt.s32.f32 %v559_v3  ;;  %v2114_v12 = vcvt.s32.f32 %v556_v4  ;;  %v2116_v13 = vcvt.s32.f32 %v557_v5  ;;  %p1755_p6 = scmp.ne.s32.totalorder %s1753_s22, %s1754_s20  ;;  %p1760_p11 = scmp.lt.s32.totalorder %s1758_s23, %s1754_s20 }
  0x90   : > { %v2120_v16 = vcvt.s32.f32 %v554_v6  ;;  %v2122_v17 = vcvt.s32.f32 %v555_v7  ;;  %v2124_v18 = vcvt.s32.f32 %v552_v8  ;;  %v2126_v19 = vcvt.s32.f32 %v553_v9 }
  0x91   : > { %v600_v21 = vadd.f32 1.0, %v572_v10  ;;  %v601_v22 = vadd.f32 1.0, %v573_v11  ;;  %v2138_v27 = vadd.f32 1.0, %v2114_v12  ;;  %v740_v29 = vmax.f32 %v2129_v23, %v572_v10  ;;  %p1756_p8 = pnand %p1755_p6, %p2003_p7  ;;  %p1761_p1 = por %p1760_p11, %p1759_p5 }
  0x92   : > { %v744_v30 = vmax.f32 %v2129_v23, %v573_v11  ;;  %v741_v32 = vmax.f32 %v2131_v24, %v572_v10  ;;  %v745_v33 = vmax.f32 %v2131_v24, %v573_v11  ;;  %v742_v35 = vmax.f32 %v2133_v25, %v572_v10 }
  0x93   : > { %v667_v36 = vmin.f32 %v2140_v28, %v600_v21  ;;  %v671_v37 = vmin.f32 %v2140_v28, %v601_v22  ;;  %v668_v38 = vmin.f32 %v2144_v31, %v600_v21  ;;  %v672_v39 = vmin.f32 %v2144_v31, %v601_v22  ;;  %p1757_p13 = pneg %p1756_p8 }
  0x94   : > { %v669_v40 = vmin.f32 %v2148_v34, %v600_v21  ;;  %v673_v41 = vmin.f32 %v2148_v34, %v601_v22  ;;  %v746_v42 = vmax.f32 %v2133_v25, %v573_v11  ;;  %v670_v50 = vmin.f32 %v2158_v43, %v600_v21 }
  0x95   : > { %v804_v44 = vsub.f32 %v667_v36, %v740_v29  ;;  %v808_v45 = vsub.f32 %v671_v37, %v744_v30  ;;  %v805_v46 = vsub.f32 %v668_v38, %v741_v32  ;;  %v809_v47 = vsub.f32 %v672_v39, %v745_v33  ;;  %p1762_p3 = pnand %p1761_p1, %p1757_p13 }
  0x96   : > { %v806_v48 = vsub.f32 %v669_v40, %v742_v35  ;;  %v810_v49 = vsub.f32 %v673_v41, %v746_v42  ;;  %v674_v51 = vmin.f32 %v2158_v43, %v601_v22  ;;  %v743_v58 = vmax.f32 %v2135_v26, %v572_v10 }
  0x97   : > { %v868_v52 = vmax.f32 %v804_v44, 0.0  ;;  %v872_v53 = vmax.f32 %v808_v45, 0.0  ;;  %v869_v54 = vmax.f32 %v805_v46, 0.0  ;;  %v873_v55 = vmax.f32 %v809_v47, 0.0 }
  0x98   : > { %v870_v56 = vmax.f32 %v806_v48, 0.0  ;;  %v874_v57 = vmax.f32 %v810_v49, 0.0  ;;  %v747_v59 = vmax.f32 %v2135_v26, %v573_v11  ;;  %v599_v62 = vadd.f32 1.0, %v2116_v13 }
  0x99   : > { %v908_v60 = vpack.c.bf16 %v872_v53, %v868_v52  ;;  %v909_v61 = vpack.c.bf16 %v873_v55, %v869_v54  ;;  %v659_v63 = vmin.f32 %v2140_v28, %v2138_v27  ;;  %v807_v3 = vsub.f32 %v670_v50, %v743_v58 }
  0x9a   : > { %v910_v2 = vpack.c.bf16 %v874_v57, %v870_v56  ;;  %v811_v4 = vsub.f32 %v674_v51, %v747_v59  ;;  %v732_v5 = vmax.f32 %v2129_v23, %v2114_v12  ;;  %v663_v6 = vmin.f32 %v2140_v28, %v599_v62 }
  0x9b   : > { %924 = vmatpush.bf16.msra.mxu0 %v908_v60  ;;  %943 = vmatpush.bf16.msra.mxu1 %v909_v61  ;;  %v736_v7 = vmax.f32 %v2129_v23, %v2116_v13  ;;  %v660_v8 = vmin.f32 %v2144_v31, %v2138_v27  ;;  %v2175_v9 = vadd.f32 1.0, %v2120_v16  ;;  %v871_v10 = vmax.f32 %v807_v3, 0.0 }
  0x9c   : > { %962 = vmatpush.bf16.msra.mxu2 %v910_v2  ;;  %v875_v11 = vmax.f32 %v811_v4, 0.0  ;;  %v796_v14 = vsub.f32 %v659_v63, %v732_v5  ;;  %v664_v20 = vmin.f32 %v2144_v31, %v599_v62  ;;  %v733_v22 = vmax.f32 %v2131_v24, %v2114_v12 }
  0x9d   : > { %v800_v21 = vsub.f32 %v663_v6, %v736_v7  ;;  %v737_v29 = vmax.f32 %v2131_v24, %v2116_v13  ;;  %v661_v30 = vmin.f32 %v2148_v34, %v2138_v27  ;;  %v665_v35 = vmin.f32 %v2148_v34, %v599_v62 }
  0x9e   : > { %v911_v32 = vpack.c.bf16 %v875_v11, %v871_v10  ;;  %v860_v33 = vmax.f32 %v796_v14, 0.0  ;;  %v734_v36 = vmax.f32 %v2133_v25, %v2114_v12  ;;  %v797_v38 = vsub.f32 %v660_v8, %v733_v22 }
  0x9f   : > { %v864_v37 = vmax.f32 %v800_v21, 0.0  ;;  %v801_v39 = vsub.f32 %v664_v20, %v737_v29  ;;  %v738_v40 = vmax.f32 %v2133_v25, %v2116_v13  ;;  %v662_v42 = vmin.f32 %v2158_v43, %v2138_v27 }
  0xa0   : > { %981 = vmatpush.bf16.msra.mxu3 %v911_v32  ;;  %v798_v41 = vsub.f32 %v661_v30, %v734_v36  ;;  %v666_v44 = vmin.f32 %v2158_v43, %v599_v62  ;;  %v735_v45 = vmax.f32 %v2135_v26, %v2114_v12  ;;  %v861_v47 = vmax.f32 %v797_v38, 0.0 }
  0xa1   : > { %v904_v46 = vpack.c.bf16 %v864_v37, %v860_v33  ;;  %v865_v48 = vmax.f32 %v801_v39, 0.0  ;;  %v802_v49 = vsub.f32 %v665_v35, %v738_v40  ;;  %v739_v51 = vmax.f32 %v2135_v26, %v2116_v13 }
  0xa2   : > { %v862_v50 = vmax.f32 %v798_v41, 0.0  ;;  %v799_v52 = vsub.f32 %v662_v42, %v735_v45  ;;  %v597_v53 = vadd.f32 1.0, %v2122_v17  ;;  %v651_v27 = vmin.f32 %v2140_v28, %v2175_v9 }
  0xa3   : > { %925 = vmatpush.bf16.msra.mxu0 %v904_v46  ;;  %v905_v54 = vpack.c.bf16 %v865_v48, %v861_v47  ;;  %v866_v55 = vmax.f32 %v802_v49, 0.0  ;;  %v724_v12 = vmax.f32 %v2129_v23, %v2120_v16  ;;  %v803_v56 = vsub.f32 %v666_v44, %v739_v51 }
  0xa4   : > { %v863_v57 = vmax.f32 %v799_v52, 0.0  ;;  %v655_v58 = vmin.f32 %v2140_v28, %v597_v53  ;;  %v728_v59 = vmax.f32 %v2129_v23, %v2122_v17  ;;  %v652_v61 = vmin.f32 %v2144_v31, %v2175_v9 }
  0xa5   : > { %944 = vmatpush.bf16.msra.mxu1 %v905_v54  ;;  %v906_v13 = vpack.c.bf16 %v866_v55, %v862_v50  ;;  %v788_v60 = vsub.f32 %v651_v27, %v724_v12  ;;  %v656_v62 = vmin.f32 %v2144_v31, %v597_v53  ;;  %v867_v63 = vmax.f32 %v803_v56, 0.0 }
  0xa6   : > { %v792_v2 = vsub.f32 %v655_v58, %v728_v59  ;;  %v725_v3 = vmax.f32 %v2131_v24, %v2120_v16  ;;  %v729_v4 = vmax.f32 %v2131_v24, %v2122_v17  ;;  %v653_v6 = vmin.f32 %v2148_v34, %v2175_v9 }
  0xa7   : > { %963 = vmatpush.bf16.msra.mxu2 %v906_v13  ;;  %v852_v5 = vmax.f32 %v788_v60, 0.0  ;;  %v657_v7 = vmin.f32 %v2148_v34, %v597_v53  ;;  %v726_v8 = vmax.f32 %v2133_v25, %v2120_v16  ;;  %v907_v10 = vpack.c.bf16 %v867_v63, %v863_v57 }
  0xa8   : > { %v856_v11 = vmax.f32 %v792_v2, 0.0  ;;  %v789_v14 = vsub.f32 %v652_v61, %v725_v3  ;;  %v793_v20 = vsub.f32 %v656_v62, %v729_v4  ;;  %v730_v21 = vmax.f32 %v2133_v25, %v2122_v17 }
  0xa9   : > { %v790_v22 = vsub.f32 %v653_v6, %v726_v8  ;;  %v654_v29 = vmin.f32 %v2158_v43, %v2175_v9  ;;  %v658_v30 = vmin.f32 %v2158_v43, %v597_v53  ;;  %982 = vmatpush.bf16.msra.mxu3 %v907_v10  ;;  %v727_v36 = vmax.f32 %v2135_v26, %v2120_v16 }
  0xaa   : > { %v900_v32 = vpack.c.bf16 %v856_v11, %v852_v5  ;;  %v853_v33 = vmax.f32 %v789_v14, 0.0  ;;  %v857_v35 = vmax.f32 %v793_v20, 0.0  ;;  %v794_v37 = vsub.f32 %v657_v7, %v730_v21 }
  0xab   : > { %v854_v38 = vmax.f32 %v790_v22, 0.0  ;;  %v731_v39 = vmax.f32 %v2135_v26, %v2122_v17  ;;  %v594_v40 = vadd.f32 1.0, %v2124_v18  ;;  %v791_v42 = vsub.f32 %v654_v29, %v727_v36 }
  0xac   : > { %926 = vmatpush.bf16.msra.mxu0 %v900_v32  ;;  %v901_v41 = vpack.c.bf16 %v857_v35, %v853_v33  ;;  %v595_v9 = vadd.f32 1.0, %v2126_v19  ;;  %v716_v44 = vmax.f32 %v2129_v23, %v2124_v18  ;;  %v858_v45 = vmax.f32 %v794_v37, 0.0 }
  0xad   : > { %v795_v46 = vsub.f32 %v658_v30, %v731_v39  ;;  %v643_v47 = vmin.f32 %v2140_v28, %v594_v40  ;;  %v720_v16 = vmax.f32 %v2129_v23, %v2126_v19  ;;  %v855_v48 = vmax.f32 %v791_v42, 0.0 }
  0xae   : > { %945 = vmatpush.bf16.msra.mxu1 %v901_v41  ;;  %v647_v17 = vmin.f32 %v2140_v28, %v595_v9  ;;  %v644_v49 = vmin.f32 %v2144_v31, %v594_v40  ;;  %v648_v50 = vmin.f32 %v2144_v31, %v595_v9  ;;  %v902_v51 = vpack.c.bf16 %v858_v45, %v854_v38 }
  0xaf   : > { %v859_v52 = vmax.f32 %v795_v46, 0.0  ;;  %v780_v53 = vsub.f32 %v643_v47, %v716_v44  ;;  %v717_v54 = vmax.f32 %v2131_v24, %v2124_v18  ;;  %v721_v27 = vmax.f32 %v2131_v24, %v2126_v19 }
  0xb0   : > { %v784_v55 = vsub.f32 %v647_v17, %v720_v16  ;;  %v645_v12 = vmin.f32 %v2148_v34, %v594_v40  ;;  %v649_v56 = vmin.f32 %v2148_v34, %v595_v9  ;;  %964 = vmatpush.bf16.msra.mxu2 %v902_v51  ;;  %v718_v13 = vmax.f32 %v2133_v25, %v2124_v18 }
  0xb1   : > { %v903_v57 = vpack.c.bf16 %v859_v52, %v855_v48  ;;  %v844_v58 = vmax.f32 %v780_v53, 0.0  ;;  %v781_v59 = vsub.f32 %v644_v49, %v717_v54  ;;  %v785_v61 = vsub.f32 %v648_v50, %v721_v27 }
  0xb2   : > { %v848_v60 = vmax.f32 %v784_v55, 0.0  ;;  %v722_v62 = vmax.f32 %v2133_v25, %v2126_v19  ;;  %v646_v63 = vmin.f32 %v2158_v43, %v594_v40  ;;  %v782_v3 = vsub.f32 %v645_v12, %v718_v13 }
  0xb3   : > { %983 = vmatpush.bf16.msra.mxu3 %v903_v57  ;;  %v845_v2 = vmax.f32 %v781_v59, 0.0  ;;  %v650_v4 = vmin.f32 %v2158_v43, %v595_v9  ;;  %v719_v5 = vmax.f32 %v2135_v26, %v2124_v18  ;;  %v849_v7 = vmax.f32 %v785_v61, 0.0 }
  0xb4   : > { %v896_v6 = vpack.c.bf16 %v848_v60, %v844_v58  ;;  %v786_v8 = vsub.f32 %v649_v56, %v722_v62  ;;  %v723_v10 = vmax.f32 %v2135_v26, %v2126_v19  ;;  %v846_v11 = vmax.f32 %v782_v3, 0.0 }
  0xb5   : > { %v783_v14 = vsub.f32 %v646_v63, %v719_v5  ;;  %v550_v20 = vadd.s32 48, %v2104_v1  ;;  %v551_v21 = vadd.s32 56, %v2104_v1  ;;  %v897_v22 = vpack.c.bf16 %v849_v7, %v845_v2 }
  0xb6   : > { %927 = vmatpush.bf16.msra.mxu0 %v896_v6  ;;  %v850_v29 = vmax.f32 %v786_v8, 0.0  ;;  %v787_v30 = vsub.f32 %v650_v4, %v723_v10  ;;  %v548_v32 = vadd.s32 32, %v2104_v1  ;;  %v549_v36 = vadd.s32 40, %v2104_v1 }
  0xb7   : > { %v847_v33 = vmax.f32 %v783_v14, 0.0  ;;  %v564_v18 = vcvt.s32.f32 %v550_v20  ;;  %v565_v35 = vcvt.s32.f32 %v551_v21  ;;  %946 = vmatpush.bf16.msra.mxu1 %v897_v22  ;;  %v2258_v39 = vadd.s32 16, %v2104_v1 }
  0xb8   : > { %v898_v37 = vpack.c.bf16 %v850_v29, %v846_v11  ;;  %v851_v19 = vmax.f32 %v787_v30, 0.0  ;;  %v2255_v38 = vcvt.s32.f32 %v548_v32  ;;  %v563_v7 = vcvt.s32.f32 %v549_v36 }
  0xb9   : > { %v592_v40 = vadd.f32 1.0, %v564_v18  ;;  %v593_v41 = vadd.f32 1.0, %v565_v35  ;;  %v708_v42 = vmax.f32 %v2129_v23, %v564_v18  ;;  %v712_v9 = vmax.f32 %v2129_v23, %v565_v35 }
  0xba   : > { %965 = vmatpush.bf16.msra.mxu2 %v898_v37  ;;  %v899_v44 = vpack.c.bf16 %v851_v19, %v847_v33  ;;  %v709_v45 = vmax.f32 %v2131_v24, %v564_v18  ;;  %v713_v46 = vmax.f32 %v2131_v24, %v565_v35  ;;  %v710_v47 = vmax.f32 %v2133_v25, %v564_v18 }
  0xbb   : > { %v635_v16 = vmin.f32 %v2140_v28, %v592_v40  ;;  %v639_v48 = vmin.f32 %v2140_v28, %v593_v41  ;;  %v636_v17 = vmin.f32 %v2144_v31, %v592_v40  ;;  %v640_v49 = vmin.f32 %v2144_v31, %v593_v41 }
  0xbc   : > { %984 = vmatpush.bf16.msra.mxu3 %v899_v44  ;;  %v637_v50 = vmin.f32 %v2148_v34, %v592_v40  ;;  %v641_v51 = vmin.f32 %v2148_v34, %v593_v41  ;;  %v714_v52 = vmax.f32 %v2133_v25, %v565_v35  ;;  %v638_v53 = vmin.f32 %v2158_v43, %v592_v40 }
  0xbd   : > { %v772_v54 = vsub.f32 %v635_v16, %v708_v42  ;;  %v776_v55 = vsub.f32 %v639_v48, %v712_v9  ;;  %v773_v27 = vsub.f32 %v636_v17, %v709_v45  ;;  %v777_v12 = vsub.f32 %v640_v49, %v713_v46 }
  0xbe   : > { %v774_v56 = vsub.f32 %v637_v50, %v710_v47  ;;  %v778_v57 = vsub.f32 %v641_v51, %v714_v52  ;;  %v642_v58 = vmin.f32 %v2158_v43, %v593_v41  ;;  %v711_v59 = vmax.f32 %v2135_v26, %v564_v18 }
  0xbf   : > { %v836_v13 = vmax.f32 %v772_v54, 0.0  ;;  %v840_v60 = vmax.f32 %v776_v55, 0.0  ;;  %v837_v61 = vmax.f32 %v773_v27, 0.0  ;;  %v841_v62 = vmax.f32 %v777_v12, 0.0 }
  0xc0   : > { %v838_v63 = vmax.f32 %v774_v56, 0.0  ;;  %v842_v2 = vmax.f32 %v778_v57, 0.0  ;;  %v715_v3 = vmax.f32 %v2135_v26, %v565_v35  ;;  %v775_v4 = vsub.f32 %v638_v53, %v711_v59 }
  0xc1   : > { %v892_v5 = vpack.c.bf16 %v840_v60, %v836_v13  ;;  %v893_v6 = vpack.c.bf16 %v841_v62, %v837_v61  ;;  %v590_v8 = vadd.f32 1.0, %v2255_v38  ;;  %v700_v20 = vmax.f32 %v2129_v23, %v2255_v38 }
  0xc2   : > { %v894_v10 = vpack.c.bf16 %v842_v2, %v838_v63  ;;  %v779_v11 = vsub.f32 %v642_v58, %v715_v3  ;;  %v839_v14 = vmax.f32 %v775_v4, 0.0  ;;  %v591_v21 = vadd.f32 1.0, %v563_v7 }
  0xc3   : > { %928 = vmatpush.bf16.msra.mxu0 %v892_v5  ;;  %947 = vmatpush.bf16.msra.mxu1 %v893_v6  ;;  %v627_v22 = vmin.f32 %v2140_v28, %v590_v8  ;;  %v704_v29 = vmax.f32 %v2129_v23, %v563_v7  ;;  %v628_v30 = vmin.f32 %v2144_v31, %v590_v8  ;;  %v547_v12 = vadd.s32 24, %v2104_v1 }
  0xc4   : > { %966 = vmatpush.bf16.msra.mxu2 %v894_v10  ;;  %v843_v32 = vmax.f32 %v779_v11, 0.0  ;;  %v701_v33 = vmax.f32 %v2131_v24, %v2255_v38  ;;  %v705_v18 = vmax.f32 %v2131_v24, %v563_v7  ;;  %v629_v35 = vmin.f32 %v2148_v34, %v590_v8 }
  0xc5   : > { %v631_v36 = vmin.f32 %v2140_v28, %v591_v21  ;;  %v764_v37 = vsub.f32 %v627_v22, %v700_v20  ;;  %v632_v19 = vmin.f32 %v2144_v31, %v591_v21  ;;  %v633_v40 = vmin.f32 %v2148_v34, %v591_v21 }
  0xc6   : > { %v895_v41 = vpack.c.bf16 %v843_v32, %v839_v14  ;;  %v765_v42 = vsub.f32 %v628_v30, %v701_v33  ;;  %v702_v9 = vmax.f32 %v2133_v25, %v2255_v38  ;;  %v706_v44 = vmax.f32 %v2133_v25, %v563_v7 }
  0xc7   : > { %v768_v45 = vsub.f32 %v631_v36, %v704_v29  ;;  %v828_v46 = vmax.f32 %v764_v37, 0.0  ;;  %v769_v47 = vsub.f32 %v632_v19, %v705_v18  ;;  %v630_v16 = vmin.f32 %v2158_v43, %v590_v8 }
  0xc8   : > { %985 = vmatpush.bf16.msra.mxu3 %v895_v41  ;;  %v829_v48 = vmax.f32 %v765_v42, 0.0  ;;  %v766_v17 = vsub.f32 %v629_v35, %v702_v9  ;;  %v770_v49 = vsub.f32 %v633_v40, %v706_v44  ;;  %v634_v50 = vmin.f32 %v2158_v43, %v591_v21 }
  0xc9   : > { %v832_v51 = vmax.f32 %v768_v45, 0.0  ;;  %v833_v52 = vmax.f32 %v769_v47, 0.0  ;;  %v703_v53 = vmax.f32 %v2135_v26, %v2255_v38  ;;  %v707_v54 = vmax.f32 %v2135_v26, %v563_v7 }
  0xca   : > { %v830_v55 = vmax.f32 %v766_v17, 0.0  ;;  %v834_v27 = vmax.f32 %v770_v49, 0.0  ;;  %v560_v56 = vcvt.s32.f32 %v2258_v39  ;;  %v561_v61 = vcvt.s32.f32 %v547_v12 }
  0xcb   : > { %v888_v57 = vpack.c.bf16 %v832_v51, %v828_v46  ;;  %v889_v58 = vpack.c.bf16 %v833_v52, %v829_v48  ;;  %v767_v59 = vsub.f32 %v630_v16, %v703_v53  ;;  %v771_v13 = vsub.f32 %v634_v50, %v707_v54 }
  0xcc   : > { %v890_v60 = vpack.c.bf16 %v834_v27, %v830_v55  ;;  %v588_v62 = vadd.f32 1.0, %v560_v56  ;;  %v692_v63 = vmax.f32 %v2129_v23, %v560_v56  ;;  %v693_v3 = vmax.f32 %v2131_v24, %v560_v56 }
  0xcd   : > { %929 = vmatpush.bf16.msra.mxu0 %v888_v57  ;;  %948 = vmatpush.bf16.msra.mxu1 %v889_v58  ;;  %v831_v38 = vmax.f32 %v767_v59, 0.0  ;;  %v835_v2 = vmax.f32 %v771_v13, 0.0  ;;  %v694_v4 = vmax.f32 %v2133_v25, %v560_v56  ;;  %v589_v5 = vadd.f32 1.0, %v561_v61 }
  0xce   : > { %967 = vmatpush.bf16.msra.mxu2 %v890_v60  ;;  %v619_v39 = vmin.f32 %v2140_v28, %v588_v62  ;;  %v696_v6 = vmax.f32 %v2129_v23, %v561_v61  ;;  %v620_v7 = vmin.f32 %v2144_v31, %v588_v62  ;;  %v697_v10 = vmax.f32 %v2131_v24, %v561_v61 }
  0xcf   : > { %v891_v8 = vpack.c.bf16 %v835_v2, %v831_v38  ;;  %v621_v11 = vmin.f32 %v2148_v34, %v588_v62  ;;  %v698_v14 = vmax.f32 %v2133_v25, %v561_v61  ;;  %v623_v20 = vmin.f32 %v2140_v28, %v589_v5 }
  0xd0   : > { %v756_v21 = vsub.f32 %v619_v39, %v692_v63  ;;  %v624_v22 = vmin.f32 %v2144_v31, %v589_v5  ;;  %v757_v29 = vsub.f32 %v620_v7, %v693_v3  ;;  %v625_v30 = vmin.f32 %v2148_v34, %v589_v5 }
  0xd1   : > { %986 = vmatpush.bf16.msra.mxu3 %v891_v8  ;;  %v758_v32 = vsub.f32 %v621_v11, %v694_v4  ;;  %v622_v33 = vmin.f32 %v2158_v43, %v588_v62  ;;  %v626_v18 = vmin.f32 %v2158_v43, %v589_v5  ;;  %v760_v35 = vsub.f32 %v623_v20, %v696_v6 }
  0xd2   : > { %v820_v36 = vmax.f32 %v756_v21, 0.0  ;;  %v761_v37 = vsub.f32 %v624_v22, %v697_v10  ;;  %v821_v19 = vmax.f32 %v757_v29, 0.0  ;;  %v762_v40 = vsub.f32 %v625_v30, %v698_v14 }
  0xd3   : > { %v822_v41 = vmax.f32 %v758_v32, 0.0  ;;  %v695_v42 = vmax.f32 %v2135_v26, %v560_v56  ;;  %v699_v9 = vmax.f32 %v2135_v26, %v561_v61  ;;  %v824_v44 = vmax.f32 %v760_v35, 0.0  ;;  %v481_v35 = vld [vmem:[%s372_s17] sm:$0xf] }
  0xd4   : > { %v825_v45 = vmax.f32 %v761_v37, 0.0  ;;  %v489_v46 = vadd.s32 8, %v2104_v1  ;;  %v2317_v47 = vcvt.s32.f32 %v2104_v1  ;;  %v826_v16 = vmax.f32 %v762_v40, 0.0 }
  0xd5   : > { %v759_v48 = vsub.f32 %v622_v33, %v695_v42  ;;  %v763_v17 = vsub.f32 %v626_v18, %v699_v9  ;;  %v884_v49 = vpack.c.bf16 %v824_v44, %v820_v36  ;;  %v483_v36 = vld [vmem:[%s392_s5] sm:$0xf]  ;;  %v514_v40 = vperm.slane %v481_v35, 0 }
  0xd6   : > { %v885_v50 = vpack.c.bf16 %v825_v45, %v821_v19  ;;  %v2319_v51 = vcvt.s32.f32 %v489_v46  ;;  %v2322_v52 = vadd.f32 1.0, %v2317_v47  ;;  %v886_v53 = vpack.c.bf16 %v826_v16, %v822_v41 }
  0xd7   : > { %v823_v54 = vmax.f32 %v759_v48, 0.0  ;;  %v827_v55 = vmax.f32 %v763_v17, 0.0  ;;  %v684_v27 = vmax.f32 %v2129_v23, %v2317_v47  ;;  %930 = vmatpush.bf16.msra.mxu0 %v884_v49  ;;  %v685_v59 = vmax.f32 %v2131_v24, %v2317_v47 }
  0xd8   : > { %949 = vmatpush.bf16.msra.mxu1 %v885_v50  ;;  %v2327_v1 = vadd.f32 1.0, %v2319_v51  ;;  %v611_v12 = vmin.f32 %v2140_v28, %v2322_v52  ;;  %v688_v56 = vmax.f32 %v2129_v23, %v2319_v51  ;;  %v612_v57 = vmin.f32 %v2144_v31, %v2322_v52  ;;  %968 = vmatpush.bf16.msra.mxu2 %v886_v53 }
  0xd9   : > { %v887_v58 = vpack.c.bf16 %v827_v55, %v823_v54  ;;  %v689_v13 = vmax.f32 %v2131_v24, %v2319_v51  ;;  %v613_v60 = vmin.f32 %v2148_v34, %v2322_v52  ;;  %v686_v2 = vmax.f32 %v2133_v25, %v2317_v47 }
  0xda   : > { %v615_v61 = vmin.f32 %v2140_v28, %v2327_v1  ;;  %v748_v62 = vsub.f32 %v611_v12, %v684_v27  ;;  %v616_v23 = vmin.f32 %v2144_v31, %v2327_v1  ;;  %v617_v63 = vmin.f32 %v2148_v34, %v2327_v1 }
  0xdb   : > { %987 = vmatpush.bf16.msra.mxu3 %v887_v58  ;;  %v749_v38 = vsub.f32 %v612_v57, %v685_v59  ;;  %v690_v24 = vmax.f32 %v2133_v25, %v2319_v51  ;;  %v614_v3 = vmin.f32 %v2158_v43, %v2322_v52  ;;  %v618_v31 = vmin.f32 %v2158_v43, %v2327_v1  ;;  %v1464_v43 = vld [vmem:[#allocation11] sm:$0xff] }
  0xdc   : > { %v752_v4 = vsub.f32 %v615_v61, %v688_v56  ;;  %v812_v28 = vmax.f32 %v748_v62, 0.0  ;;  %v753_v5 = vsub.f32 %v616_v23, %v689_v13  ;;  %v750_v6 = vsub.f32 %v613_v60, %v686_v2 }
  0xdd   : > { %v813_v39 = vmax.f32 %v749_v38, 0.0  ;;  %v754_v34 = vsub.f32 %v617_v63, %v690_v24  ;;  %v687_v7 = vmax.f32 %v2135_v26, %v2317_v47  ;;  %v691_v25 = vmax.f32 %v2135_v26, %v2319_v51  ;;  %v1465_v26 = vld [vmem:[#allocation11 + $0x8] sm:$0xff] }
  0xde   : > { %v816_v8 = vmax.f32 %v752_v4, 0.0  ;;  %v817_v10 = vmax.f32 %v753_v5, 0.0  ;;  %v814_v11 = vmax.f32 %v750_v6, 0.0  ;;  %v485_v37 = vadd.f32 %v483_v36, %v481_v35 }
  0xdf   : > { %v818_v14 = vmax.f32 %v754_v34, 0.0  ;;  %v751_v20 = vsub.f32 %v614_v3, %v687_v7  ;;  %v755_v29 = vsub.f32 %v618_v31, %v691_v25  ;;  %v515_v42 = vperm.slane %v481_v35, 1 }
  0xe0   : > { %v880_v21 = vpack.c.bf16 %v816_v8, %v812_v28  ;;  %v881_v22 = vpack.c.bf16 %v817_v10, %v813_v39  ;;  %v497_v19 = vperm.slane %v485_v37, 0  ;;  %v498_v41 = vperm.slane %v485_v37, 1 }
  0xe1   : > { %v882_v30 = vpack.c.bf16 %v818_v14, %v814_v11  ;;  %v815_v32 = vmax.f32 %v751_v20, 0.0  ;;  %v819_v33 = vmax.f32 %v755_v29, 0.0  ;;  %v522_v44 = vmax.f32 %v514_v40, %v2317_v47 }
  0xe2   : > { %931 = vmatpush.bf16.msra.mxu0 %v880_v21  ;;  %950 = vmatpush.bf16.msra.mxu1 %v881_v22  ;;  %v505_v9 = vmin.f32 %v497_v19, %v2322_v52  ;;  %v506_v45 = vmin.f32 %v498_v41, %v2322_v52  ;;  %v523_v46 = vmax.f32 %v515_v42, %v2317_v47  ;;  %v499_v55 = vperm.slane %v485_v37, 2 }
  0xe3   : > { %969 = vmatpush.bf16.msra.mxu2 %v882_v30  ;;  %v883_v18 = vpack.c.bf16 %v819_v33, %v815_v32  ;;  %v509_v16 = vmin.f32 %v497_v19, %v2327_v1  ;;  %v526_v48 = vmax.f32 %v514_v40, %v2319_v51  ;;  %v510_v17 = vmin.f32 %v498_v41, %v2327_v1 }
  0xe4   : > { %v527_v49 = vmax.f32 %v515_v42, %v2319_v51  ;;  %v530_v50 = vsub.f32 %v505_v9, %v522_v44  ;;  %v516_v27 = vperm.slane %v481_v35, 2  ;;  %v2372_v12 = vmul.f32 %v2118_v15, %v483_v36 }
  0xe5   : > { %932 = vmatmul.bf16.vlgmr.msra.gmra.mxu0 %v1464_v43  ;;  %951 = vmatmul.bf16.vlgmr.msra.gmra.mxu1 %v1464_v43  ;;  %v531_v56 = vsub.f32 %v506_v45, %v523_v46  ;;  %v534_v57 = vsub.f32 %v509_v16, %v526_v48  ;;  %v500_v13 = vperm.slane %v485_v37, 3  ;;  %v517_v60 = vperm.slane %v481_v35, 3 }
  0xe6   : > { %988 = vmatpush.bf16.msra.mxu3 %v883_v18  ;;  %970 = vmatmul.bf16.vlgmr.msra.gmra.mxu2 %v1464_v43  ;;  %v535_v58 = vsub.f32 %v510_v17, %v527_v49  ;;  %v2374_v59 = vmax.f32 %v530_v50, 0.0  ;;  %v507_v61 = vmin.f32 %v499_v55, %v2322_v52  ;;  %v524_v62 = vmax.f32 %v516_v27, %v2317_v47 }
  0xe7   : > { %v511_v23 = vmin.f32 %v499_v55, %v2327_v1  ;;  %v528_v63 = vmax.f32 %v516_v27, %v2319_v51  ;;  %v2380_v38 = vmax.f32 %v531_v56, 0.0  ;;  %v2382_v2 = vmax.f32 %v534_v57, 0.0 }
  0xe8   : > { %v2384_v15 = vmax.f32 %v535_v58, 0.0  ;;  %v2387_v24 = vperm.slane %v2372_v12, 1  ;;  %v2390_v3 = vperm.slane %v2372_v12, 0  ;;  %v508_v28 = vmin.f32 %v500_v13, %v2322_v52 }
  0xe9   : > { %989 = vmatmul.bf16.vlgmr.msra.gmra.mxu3 %v1464_v43  ;;  %v525_v5 = vmax.f32 %v517_v60, %v2317_v47  ;;  %v512_v31 = vmin.f32 %v500_v13, %v2327_v1  ;;  %v529_v39 = vmax.f32 %v517_v60, %v2319_v51  ;;  %v532_v34 = vsub.f32 %v507_v61, %v524_v62  ;;  %v2432_v13 = vld [vmem:[%s412_s9] sm:$0xf] }
  0xea   : > { %v536_v10 = vsub.f32 %v511_v23, %v528_v63  ;;  %1550 = vrcp.f32 %v2387_v24  ;;  %v2427_v50 = vperm.slane %v2372_v12, 3  ;;  %vm1140_vm2 = vweird.f32 %v2387_v24 }
  0xeb   : > { %1552 = vrcp.f32 %v2390_v3  ;;  %v533_v47 = vsub.f32 %v508_v28, %v525_v5  ;;  %v537_v51 = vsub.f32 %v512_v31, %v529_v39  ;;  %v2402_v20 = vmax.f32 %v532_v34, 0.0 }
  0xec   : > { %v2404_v22 = vmax.f32 %v536_v10, 0.0  ;;  %vm1083_vm3 = vcmask 1041408   ;;  %vm2450_vm5 = vcmp.lt.s32.totalorder %v487_v0, 512  ;;  %vm1125_vm8 = vweird.f32 %v2390_v3 }
  0xed   : > { %v2408_v32 = vmax.f32 %v533_v47, 0.0  ;;  %v2410_v18 = vmax.f32 %v537_v51, 0.0 }
  0xf0   : > { %v2406_v30 = vpop.eup %1550 }
  0xf1   : > { %v2415_v35 = vpop.eup %1552  ;;  %v1136_v45 = vmul.f32 %v2406_v30, %v2387_v24  ;;  %vm1141_vm4 = vweird.f32 %v2406_v30 }
  0xf2   : > { %v1121_v48 = vmul.f32 %v2415_v35, %v2390_v3  ;;  %vm1126_vm9 = vweird.f32 %v2415_v35  ;;  %vm2488_vm10 = vmor %vm1140_vm2, %vm1141_vm4 }
  0xf3   : > { %v1137_v27 = vsub.f32 1.0, %v1136_v45 }
  0xf4   : > { %v1122_v60 = vsub.f32 1.0, %v1121_v48 }
  0xf5   : > { %937 = vmatmul.bf16.gmra.mxu0 %v1465_v26  ;;  %956 = vmatmul.bf16.gmra.mxu1 %v1465_v26 }
  0xf6   : > { %975 = vmatmul.bf16.gmra.mxu2 %v1465_v26 }
  0xf9   : > { %994 = vmatmul.bf16.gmra.mxu3 %v1465_v26  ;;  %v2413_v26 = vperm.slane %v2372_v12, 2 }
  0xfb   : > { %1554 = vrcp.f32 %v2413_v26  ;;  %vm1155_vm6 = vweird.f32 %v2413_v26 }
  0xfc   : > { %1556 = vrcp.f32 %v2427_v50 }
 0x162   : > { %v933_v53 = vpop.f32.mrf.mxu0  ;;  %v952_v54 = vpop.f32.mrf.mxu1 }
 0x163   : > { %v1000_v6 = vmul.f32 %v933_v53, %v2374_v59  ;;  %v1001_v25 = vmul.f32 %v952_v54, %v2380_v38 }
 0x169   : > { %v971_v4 = vpop.f32.mrf.mxu2 }
 0x16a   : > { %v935_v7 = vpop.f32.mrf.mxu0  ;;  %v954_v8 = vpop.f32.mrf.mxu1  ;;  %v1002_v36 = vmul.f32 %v971_v4, %v2402_v20 }
 0x16b   : > { %v1004_v11 = vmul.f32 %v935_v7, %v2382_v2  ;;  %v1005_v14 = vmul.f32 %v954_v8, %v2384_v15  ;;  %v2435_v4 = vpop.eup %1554  ;;  %v1095_v7 = vperm.slane %v2432_v13, 0  ;;  %v1138_v8 = vmul.f32 %v2406_v30, %v1137_v27 }
 0x16c   : > { %v990_v52 = vpop.f32.mrf.mxu3  ;;  %vm1156_vm7 = vweird.f32 %v2435_v4 }
 0x16d   : > { %v1015_v1 = vadd.f32 %v1005_v14, %v1001_v25  ;;  %v1008_v21 = vadd.f32 %v1004_v11, %v1000_v6  ;;  %v1003_v46 = vmul.f32 %v990_v52, %v2408_v32  ;;  %v2443_v11 = vmul.f32 %v2415_v35, %v1122_v60  ;;  %vm2516_vm12 = vmor %vm1155_vm6, %vm1156_vm7 }
 0x16f   : > { %v1016_v29 = vrot.slane %v1015_v1, 4  ;;  %v1009_v37 = vrot.slane %v1008_v21, 4 }
 0x171   : > { %v1017_v43 = vadd.f32 %v1016_v29, %v1015_v1  ;;  %v973_v33 = vpop.f32.mrf.mxu2  ;;  %v1010_v17 = vadd.f32 %v1009_v37, %v1008_v21  ;;  %v2455_v21 = vpop.eup %1556 }
 0x172   : > { %v1006_v19 = vmul.f32 %v973_v33, %v2404_v22  ;;  %v938_v40 = vpop.f32.mrf.mxu0  ;;  %v957_v41 = vpop.f32.mrf.mxu1  ;;  %v2458_v33 = vadd.f32 %v2406_v30, %v1138_v8 }
 0x173   : > { %v1018_v42 = vrot.slane %v1017_v43, 2  ;;  %v1036_v57 = vmul.f32 %v938_v40, %v2374_v59  ;;  %v1011_v61 = vrot.slane %v1010_v17, 2  ;;  %v1037_v5 = vmul.f32 %v957_v41, %v2380_v38 }
 0x174   : > { %v1022_v9 = vadd.f32 %v1006_v19, %v1002_v36  ;;  %v992_v44 = vpop.f32.mrf.mxu3  ;;  %v1144_v36 = vand.u32 2147483647, %v2387_v24  ;;  %v1146_v41 = vand.u32 2147483648, %v2387_v24  ;;  %v1143_v8 = vsel %vm2488_vm10, %v2406_v30, %v2458_v33 }
 0x175   : > { %v1007_v16 = vmul.f32 %v992_v44, %v2410_v18  ;;  %v1019_v54 = vadd.f32 %v1018_v42, %v1017_v43  ;;  %v1012_v38 = vadd.f32 %v1011_v61, %v1010_v17  ;;  %v1166_v17 = vmul.f32 %v2455_v21, %v2427_v50 }
 0x176   : > { %v1023_v49 = vrot.slane %v1022_v9, 4  ;;  %vm2508_vm11 = vcmp.eq.f32.partialorder %v1144_v36, 8.507059e+37 }
 0x177   : > { %v1029_v53 = vadd.f32 %v1007_v16, %v1003_v46  ;;  %v1020_v39 = vrot.slane %v1019_v54, 1  ;;  %v1013_v42 = vrot.slane %v1012_v38, 1 }
 0x178   : > { %v1024_v55 = vadd.f32 %v1023_v49, %v1022_v9 }
 0x179   : > { %v1030_v56 = vrot.slane %v1029_v53, 4  ;;  %v976_v58 = vpop.f32.mrf.mxu2  ;;  %v1021_v29 = vadd.f32 %v1020_v39, %v1019_v54  ;;  %v1096_v39 = vperm.slane %v2432_v13, 1 }
 0x17a   : > { %v1025_v62 = vrot.slane %v1024_v55, 2  ;;  %v940_v23 = vpop.f32.mrf.mxu0  ;;  %v959_v63 = vpop.f32.mrf.mxu1  ;;  %v1038_v9 = vmul.f32 %v976_v58, %v2402_v20 }
 0x17b   : > { %v1031_v28 = vadd.f32 %v1030_v56, %v1029_v53  ;;  %v1040_v31 = vmul.f32 %v940_v23, %v2382_v2  ;;  %v1041_v59 = vmul.f32 %v959_v63, %v2384_v15  ;;  %v1151_v15 = vmul.f32 %v2435_v4, %v2413_v26 }
 0x17c   : > { %v1026_v6 = vadd.f32 %v1025_v62, %v1024_v55  ;;  %v995_v34 = vpop.f32.mrf.mxu3  ;;  %v1076_v49 = vrot.slane %v1021_v29, 7  ;;  %v1167_v23 = vsub.f32 1.0, %v1166_v17 }
 0x17d   : > { %v1032_v10 = vrot.slane %v1031_v28, 2  ;;  %v1044_v25 = vadd.f32 %v1040_v31, %v1036_v57  ;;  %v1051_v14 = vadd.f32 %v1041_v59, %v1037_v5  ;;  %v1152_v45 = vsub.f32 1.0, %v1151_v15 }
 0x17e   : > { %v1027_v2 = vrot.slane %v1026_v6, 1  ;;  %v1039_v55 = vmul.f32 %v995_v34, %v2408_v32  ;;  %v1014_v57 = vadd.f32 %v1013_v42, %v1012_v38 }
 0x17f   : > { %v1033_v52 = vadd.f32 %v1032_v10, %v1031_v28  ;;  %v1045_v47 = vrot.slane %v1044_v25, 4  ;;  %v1052_v1 = vrot.slane %v1051_v14, 4  ;;  %v1153_v60 = vmul.f32 %v2435_v4, %v1152_v45 }
 0x180   : > { %v1028_v43 = vadd.f32 %v1027_v2, %v1026_v6  ;;  %v1159_v28 = vand.u32 2147483647, %v2413_v26  ;;  %v1080_v5 = vsel %vm1079_vm0, %v1014_v57, %v1076_v49 }
 0x181   : > { %v1034_v37 = vrot.slane %v1033_v52, 1  ;;  %v1046_v19 = vadd.f32 %v1045_v47, %v1044_v25  ;;  %v1053_v40 = vadd.f32 %v1052_v1, %v1051_v14  ;;  %v978_v0 = vpop.f32.mrf.mxu2  ;;  %v1154_v25 = vadd.f32 %v2435_v4, %v1153_v60 }
 0x182   : > { %v1042_v44 = vmul.f32 %v978_v0, %v2404_v22  ;;  %v1077_v53 = vrot.slane %v1028_v43, 6  ;;  %v1161_v14 = vand.u32 2147483648, %v2413_v26 }
 0x183   : > { %v1035_v46 = vadd.f32 %v1034_v37, %v1033_v52  ;;  %v1047_v16 = vrot.slane %v1046_v19, 2  ;;  %v1054_v48 = vrot.slane %v1053_v40, 2  ;;  %v1168_v52 = vmul.f32 %v2455_v21, %v1167_v23 }
 0x184   : > { %v1058_v20 = vadd.f32 %v1042_v44, %v1038_v9  ;;  %v997_v22 = vpop.f32.mrf.mxu3 }
 0x185   : > { %v1078_v54 = vrot.slane %v1035_v46, 5  ;;  %v1055_v27 = vadd.f32 %v1054_v48, %v1053_v40  ;;  %v1043_v56 = vmul.f32 %v997_v22, %v2410_v18  ;;  %v1048_v61 = vadd.f32 %v1047_v16, %v1046_v19 }
 0x186   : > { %v1059_v58 = vrot.slane %v1058_v20, 4 }
 0x187   : > { %v1056_v32 = vrot.slane %v1055_v27, 1  ;;  %v1065_v62 = vadd.f32 %v1043_v56, %v1039_v55  ;;  %v1082_v31 = vsel %vm1081_vm1, %v1077_v53, %v1078_v54  ;;  %v1049_v38 = vrot.slane %v1048_v61, 1 }
 0x188   : > { %v1060_v63 = vadd.f32 %v1059_v58, %v1058_v20  ;;  %v1084_v34 = vsel %vm1083_vm3, %v1080_v5, %v1082_v31 }
 0x189   : > { %v1057_v59 = vadd.f32 %v1056_v32, %v1055_v27  ;;  %v1066_v6 = vrot.slane %v1065_v62, 4  ;;  %1090 = vst.msk [vmem:[%s466_s3] sm:$0xf] %vm2450_vm5, %v1084_v34 }
 0x18a   : > { %v1061_v10 = vrot.slane %v1060_v63, 2 }
 0x18b   : > { %v1067_v30 = vadd.f32 %v1066_v6, %v1065_v62 }
 0x18c   : > { %1765 = shalt.err (!%p1762_p3)
}
 0x18d   : > { %1480 = dma.vmem_to_hbm [thread:$0]  (%p2003_p7), %s1212_s27, 64, %s2496_s7, %s1194_s28   ;;  %v1147_v26 = vor.u32 1.1754944e-38, %v1146_v41  ;;  %v1062_v47 = vadd.f32 %v1061_v10, %v1060_v63  ;;  %v1097_v1 = vperm.slane %v2432_v13, 2  ;;  %vm2539_vm13 = vcmp.eq.f32.partialorder %v1159_v28, 8.507059e+37  ;;  %vm2564_vm4 = vmor %vm1125_vm8, %vm1126_vm9 }
 0x18e   : > { %v1104_v43 = vmul.f32 %v1096_v39, %v1057_v59  ;;  %v1068_v33 = vrot.slane %v1067_v30, 2  ;;  %vm1170_vm14 = vweird.f32 %v2427_v50  ;;  %vm1171_vm15 = vweird.f32 %v2455_v21  ;;  %s2673_s5 = sld [smem:[#allocation31_spill]]  ;;  %s473_s30 = scalar_lea.vmem [#allocation14], %s2078_s11 }
 0x18f   : > { %v1063_v36 = vrot.slane %v1062_v47, 1  ;;  %v1158_v37 = vsel %vm2516_vm12, %v2435_v4, %v1154_v25  ;;  %v1162_v24 = vor.u32 1.1754944e-38, %v1161_v14  ;;  %v1176_v19 = vand.u32 2147483648, %v2427_v50  ;;  %vm2553_vm2 = vmor %vm1170_vm14, %vm1171_vm15  ;;  %s1225_s9 = sshll.u32 %s473_s30, 4  ;;  %s1199_s13 = scalar_lea.sflag [#allocation15], %s2075_s10  ;;  %s1226_s9 = int_to_ptr.vmem [resolvable:$true] %s1225_s9 }
 0x190   : > { %v1050_v40 = vadd.f32 %v1049_v38, %v1048_v61  ;;  %v1069_v41 = vadd.f32 %v1068_v33, %v1067_v30  ;;  %v1169_v0 = vadd.f32 %v2455_v21, %v1168_v52  ;;  %v1174_v42 = vand.u32 2147483647, %v2427_v50 }
 0x191   : > { %v1129_v9 = vand.u32 2147483647, %v2390_v3  ;;  %v1131_v44 = vand.u32 2147483648, %v2390_v3  ;;  %v1064_v45 = vadd.f32 %v1063_v36, %v1062_v47  ;;  %v1124_v4 = vadd.f32 %v2415_v35, %v2443_v11 }
 0x192   : > { %v1108_v16 = vmul.f32 2.0, %v1104_v43  ;;  %v1070_v48 = vrot.slane %v1069_v41, 1  ;;  %v1098_v17 = vperm.slane %v2432_v13, 3  ;;  %v1148_v49 = vsel %vm2508_vm11, %v1147_v26, %v1143_v8 }
 0x193   : > { %v1105_v53 = vmul.f32 %v1097_v1, %v1064_v45  ;;  %v1163_v20 = vsel %vm2539_vm13, %v1162_v24, %v1158_v37  ;;  %v1177_v11 = vor.u32 1.1754944e-38, %v1176_v19  ;;  %v1103_v22 = vmul.f32 %v1095_v7, %v1050_v40 }
 0x194   : > { %v1071_v54 = vadd.f32 %v1070_v48, %v1069_v41  ;;  %v1173_v3 = vsel %vm2553_vm2, %v2455_v21, %v1169_v0  ;;  %vm1175_vm6 = vcmp.eq.f32.partialorder %v1174_v42, 8.507059e+37  ;;  %v1132_v55 = vor.u32 1.1754944e-38, %v1131_v44  ;;  %s1223_s8 = scalar_lea.hbm %s2673_s5, %s1460_s29  ;;  %s1786_s3 = scalar_lea.hbm %s2673_s5, 8 }
 0x195   : > { %v1109_v27 = vmul.f32 2.0, %v1105_v53  ;;  %v1128_v56 = vsel %vm2564_vm4, %v2415_v35, %v1124_v4  ;;  %vm1130_vm7 = vcmp.eq.f32.partialorder %v1129_v9, 8.507059e+37  ;;  %v1149_v57 = vmul.f32 %v1148_v49, %v1108_v16  ;;  %s1227_s16 = sshll.u32 %s1223_s8, 4  ;;  %s1228_s16 = int_to_ptr.hbm [resolvable:$true] %s1227_s16 }
 0x196   : > { %v1106_v58 = vmul.f32 %v1098_v17, %v1071_v54  ;;  %v1178_v13 = vsel %vm1175_vm6, %v1177_v11, %v1173_v3  ;;  %v1107_v61 = vmul.f32 2.0, %v1103_v22  ;;  %v1133_v32 = vsel %vm1130_vm7, %v1132_v55, %v1128_v56  ;;  %s1780_s29 = sshra.s32 %s1228_s16, 4  ;;  %s1781_s29 = int_to_ptr.hbm [resolvable:$true] %s1780_s29 }
 0x197   : > { %v1164_v60 = vmul.f32 %v1163_v20, %v1109_v27  ;;  %v1184_v21 = vrot.slane %v1149_v57, 7  ;;  %vm1092_vm8 = vcmp.gt.f32.partialorder %v2372_v12, 0.0  ;;  %s1782_s11 = scalar_lea.hbm %s1781_s29, 4  ;;  %p1787_p0 = scmp.lt.s32.totalorder %s1781_s29, %s2673_s5 }
 0x198   : > { %v1110_v7 = vmul.f32 2.0, %v1106_v58  ;;  %v1134_v23 = vmul.f32 %v1133_v32, %v1107_v61  ;;  %p1783_p2 = scmp.ne.s32.totalorder %s1781_s29, %s1782_s11  ;;  %p1788_p12 = scmp.lt.s32.totalorder %s1786_s3, %s1782_s11 }
 0x199   : > { %v1185_v18 = vrot.slane %v1164_v60, 6 }
 0x19a   : > { %v1179_v62 = vmul.f32 %v1178_v13, %v1110_v7  ;;  %v1187_v35 = vsel %vm1079_vm0, %v1134_v23, %v1184_v21  ;;  %p1784_p4 = pnand %p1783_p2, %p2003_p7  ;;  %p1789_p6 = por %p1788_p12, %p1787_p0 }
 0x19c   : > { %v1186_v63 = vrot.slane %v1179_v62, 5  ;;  %p1785_p10 = pneg %p1784_p4 }
 0x19e   : > { %v1188_v28 = vsel %vm1081_vm1, %v1185_v18, %v1186_v63  ;;  %p1790_p8 = pnand %p1789_p6, %p1785_p10 }
 0x19f   : > { %v1189_v5 = vsel %vm1083_vm3, %v1187_v35, %v1188_v28 }
 0x1a0   : > { %v1191_v31 = vsel %vm1092_vm8, %v1189_v5, 0.0 }
 0x1a1   : > { %1192 = vst.msk [vmem:[%s473_s30] sm:$0xf] %vm2450_vm5, %v1191_v31 }
 0x1a2   : > { %1793 = shalt.err (!%p1790_p8)
}
 0x1a3   : > { %1481 = dma.vmem_to_hbm [thread:$0]  (%p2003_p7), %s1226_s9, 64, %s1228_s16, %s1199_s13  }
 0x1a4 PF: > { %s2674_s10 = sld [smem:[#allocation22_spill]] }
 0x1a5   : > { %s2676_s22 = sld [smem:[#allocation23_spill]] }
 0x1aa   : > { %s1239_s20 = sand.u32 1, %s2674_s10  }
 0x1ab   : > { %p2677_p13 = scmp.ge.s32.totalorder %s2676_s22, 2  ;;  %s1240_s14 = scalar_lea.sflag [#allocation4], %s1239_s20 }
 0x1ad   : > { %p1505_p5 = pnand %p2677_p13, %p2007_p9 }
 0x1af   : > { %p1506_p11 = pneg %p1505_p5 }
 0x1b1   : > { %1827 = dma.done.wait (%p1506_p11), %s1240_s14, 64  }
 0x1b2   : > { %1829 = vsyncadd (%p1506_p11), %s1240_s14, 4294967232  ;;  %s1250_s19 = scalar_lea.sflag [#allocation15], %s1239_s20 }
 0x1b3   : > { %1831 = dma.done.wait (%p1506_p11), %s1250_s19, 64  }
 0x1b4   : > { %1833 = vsyncadd (%p1506_p11), %s1250_s19, 4294967232  ;;  %s2678_s27 = sld [smem:[#allocation24_spill]]  ;;  %s2680_s24 = smov %s1840_s25 }
 0x1b5   : > { %s2679_s23 = sld [smem:[#allocation25_spill]]  ;;  %s2681_s25 = smov %s1844_s26 }
 0x1ba   : > { %p31_p7 = scmp.ge.s32.totalorder %s2678_s27, 4  }
 0x1bb   : > { %s2682_s26 = smov %s2679_s23 }
 0x1bc   :  { %33 = sbr.rel (!%p31_p7) target bundleno = 17 (0x11), region = 158 }
 0x1c1   :  { %1256 = vsyncpa [#allocation3], 1 }
 0x1c2   :  { %1258 = vsyncpa [#allocation3 + $0x1], 1 }
 0x1c3   :  { %1259 = vsyncpa [#allocation6], 1 }
 0x1c4   :  { %1261 = vsyncpa [#allocation6 + $0x1], 1 }
 0x1c5   :  { %1262 = vsyncpa [#allocation9], 1 }
 0x1c6   :  { %1264 = vsyncpa [#allocation9 + $0x1], 1 }
 0x1c7   :  { %1265 = vsyncpa [#allocation12], 1 }
 0x1c8   :  { %1266 = vsyncpa [#allocation4], 1 }
 0x1c9   :  { %1268 = vsyncpa [#allocation4 + $0x1], 1 }
 0x1ca   :  { %1269 = vsyncpa [#allocation15], 1 }
 0x1cb   :  { %1271 = vsyncpa [#allocation15 + $0x1], 1 }

</bundles_post_ra>
